<compile_context>
chip_gen: v7x
topology: tpu7x:2x2x1
jax: 0.10.0
libtpu: 0.0.40
codegen_flags: <defaults>
</compile_context>

<pallas_src>
import functools
import math

import jax
import jax.numpy as jnp
from jax.experimental import pallas as pl
from jax.experimental.pallas import tpu as pltpu

FEATURE_DIM = 32          # feature_dim of PengWuNet (small synthetic setting)
HLC_CTX_LEN = 5           # hlc_ctx_len
PROJ_K = 5                # GraphConvolution proj Conv1d kernel size
PROJ_PAD = (PROJ_K - 1) // 2
THRESHOLD = 0.7
SIGMA = 1.0
GAMMA = 1.0
NEG_INF = -1e9

# Column layout of the fused x_fused-consuming weight matrix.  Each segment
# starts on a 128-lane vreg boundary so output slices never cross vregs.
_G1_OFF = 0                                               # 3x GraphConv1 (96 wide)
_TAP_OFF = tuple(128 * (1 + k) for k in range(PROJ_K))    # proj-conv taps (96 wide)
_AW1_OFF = 128 * (1 + PROJ_K)                             # HLC layer 1    (64 wide)
_WBIG_COLS = 128 * (2 + PROJ_K)                           # 896


def _mm(a, b):            # a @ b (f32 accumulate on the MXU)
    return jax.lax.dot_general(a, b, (((1,), (0,)), ((), ())),
                               preferred_element_type=jnp.float32)


def _mm_t(a, b):          # a @ b.T (no explicit transpose)
    return jax.lax.dot_general(a, b, (((1,), (1,)), ((), ())),
                               preferred_element_type=jnp.float32)


# ------------------------------- kernel ---------------------------------------

def pengwu_kernel(bt, t,
                  x_ref, tpos_ref, hol_mask_ref,
                  fw1_ref, fb1_ref, fw2_ref, fb2_ref,
                  wbig_ref, ab1_ref, aw2_ref, ab2_ref, acw_ref, acb_ref,
                  b1_ref, w2_ref, b2_ref, clw_ref, clb_ref,
                  hl_ref, hlc_ref):
    n = bt * t
    bf16 = jnp.bfloat16
    tpos = tpos_ref[...]                                   # (n,1) f32, value i % T

    def shift_mask(s):
        # mask[i] = 1 iff row i-s lies in the same sample as row i.
        if s > 0:
            return jnp.where(tpos >= float(s), 1.0, 0.0)
        return jnp.where(tpos <= float(t - 1 + s), 1.0, 0.0)

    def shifted(v, s):
        # result[i] = v[i - s] within each sample, 0 outside.  XLU roll + VPU
        # mask; replaces the old block-diagonal shift-matrix MXU matmuls.
        if s == 0:
            return v
        if abs(s) >= t:
            return jnp.zeros_like(v)
        return pltpu.roll(v, shift=s % n, axis=0) * shift_mask(s)

    def mean_time(v):
        # ScoreBranch adjacency = softmax(zeros) = uniform 1/T -> time mean.
        c = v.shape[-1]
        m = jnp.mean(v.reshape(bt, t, c), axis=1, keepdims=True)
        return jnp.broadcast_to(m, (bt, t, c)).reshape(n, c)

    def adj_loc_apply(v):
        # LocalizedBranch adjacency is a per-sample Toeplitz stencil:
        # (adj_loc @ v)[i] = sum_d exp(-|d|^gamma / sigma) * v[i - d].
        out = v                                            # d = 0 (exp(0) = 1)
        for d in range(1, t):
            scale = math.exp(-(float(d) ** GAMMA) / SIGMA)
            out = out + scale * (shifted(v, d) + shifted(v, -d))
        return out

    x2 = x_ref[...].astype(jnp.float32)                    # (n, D)

    # ---------------- FusionBlock (eval: dropout = identity) ------------------
    h1 = jnp.maximum(_mm(x2.astype(bf16), fw1_ref[...]) + fb1_ref[...], 0.0)
    xf = jnp.maximum(_mm(h1.astype(bf16), fw2_ref[...]) + fb2_ref[...], 0.0)   # (n,128)

    # -------- one wide bf16 MXU pass for everything that consumes x_fused -----
    big = _mm(xf.astype(bf16), wbig_ref[...])              # (n, 896) f32
    h_all = big[:, _G1_OFF:_G1_OFF + 96]                   # 3 branches' GC1 weight
    a1 = jnp.maximum(big[:, _AW1_OFF:_AW1_OFF + 64] + ab1_ref[...], 0.0)       # (n,64)

    # ---------------- HLCApproximator (causal k=5 conv via roll + mask) -------
    a2 = jnp.maximum(_mm(a1.astype(bf16), aw2_ref[...]) + ab2_ref[...], 0.0)   # (n,32)
    a2cat = jnp.concatenate(
        [shifted(a2, HLC_CTX_LEN - 1 - k) for k in range(HLC_CTX_LEN)], axis=1)
    hlc_row = _mm_t(acw_ref[...], a2cat) + acb_ref[...]    # (1, n), lane-dense
    hlc_ref[...] = hlc_row.reshape(1, 1, n).astype(hlc_ref.dtype)

    # ---------------- shared k=5 proj-conv skip (associativity + roll) --------
    proj = big[:, _TAP_OFF[PROJ_PAD]:_TAP_OFF[PROJ_PAD] + 96]
    for k in range(PROJ_K):
        if k == PROJ_PAD:
            continue
        tap = big[:, _TAP_OFF[k]:_TAP_OFF[k] + 96]         # xf @ wp[k]
        proj = proj + shifted(tap, PROJ_PAD - k)
    pre = proj + b1_ref[...]                               # graph-conv + proj biases

    # ---------------- HolisticBranch adjacency (pre-normalized cosine) --------
    ssq = jnp.sum(x2 * x2, axis=-1, keepdims=True)
    x2n = x2 * jax.lax.rsqrt(jnp.maximum(ssq, 1e-12))      # exact f32: keeps the
    cos = _mm_t(x2n, x2n)                                  # 0.7 threshold faithful
    logits = jnp.where(cos > THRESHOLD, cos, 0.0) + hol_mask_ref[...]
    logits = logits - jnp.max(logits, axis=-1, keepdims=True)
    e = jnp.exp(logits)
    adj_hol = (e * (1.0 / jnp.sum(e, axis=-1, keepdims=True))).astype(bf16)

    # ---------------- GraphConvolution(128 -> 32), three branches -------------
    y_s = jnp.maximum(mean_time(h_all[:, 0:32]) + pre[:, 0:32], 0.0)
    y_h = jnp.maximum(_mm(adj_hol, h_all[:, 32:64].astype(bf16)) + pre[:, 32:64], 0.0)
    y_l = jnp.maximum(adj_loc_apply(h_all[:, 64:96]) + pre[:, 64:96], 0.0)

    # ---------------- GraphConvolution(32 -> 32), block-diag weights ----------
    # Reference applies the identity skip to the output: 2*(adj @ (y W) + b).
    y_cat = jnp.concatenate([y_s, y_h, y_l], axis=1)       # (n, 96)
    z = _mm(y_cat.astype(bf16), w2_ref[...])               # one K=96, N=96 matmul
    b2 = b2_ref[...]
    o_s = jnp.maximum(2.0 * (mean_time(z[:, 0:32]) + b2[:, 0:32]), 0.0)
    o_h = jnp.maximum(2.0 * (_mm(adj_hol, z[:, 32:64].astype(bf16)) + b2[:, 32:64]), 0.0)
    o_l = jnp.maximum(2.0 * (adj_loc_apply(z[:, 64:96]) + b2[:, 64:96]), 0.0)

    # ---------------- HLNet classifier Linear(96, 1), lane-dense output -------
    o_cat = jnp.concatenate([o_s, o_h, o_l], axis=1)       # (n, 96)
    hl_row = _mm_t(clw_ref[...], o_cat) + clb_ref[...]     # (1, n), lane-dense
    hl_ref[...] = hl_row.reshape(1, 1, n).astype(hl_ref.dtype)


# ------------------------------ parameters ------------------------------------

def _xavier(key, shape, fan_in, fan_out):
    bound = math.sqrt(6.0 / (fan_in + fan_out))
    return jax.random.uniform(key, shape, jnp.float32, -bound, bound)


def init_params(key, feature_dim):
    keys = iter(jax.random.split(key, 32))
    p = {}
    # FusionBlock: Conv1d(D,512,1), Conv1d(512,128,1) (weights stored transposed)
    w = _xavier(next(keys), (512, feature_dim), feature_dim, 512)
    p["fw1"], p["fb1"] = w.T, jnp.full((1, 512), 0.1, jnp.float32)
    w = _xavier(next(keys), (128, 512), 512, 128)
    p["fw2"], p["fb2"] = w.T, jnp.full((1, 128), 0.1, jnp.float32)
    # HLCApproximator: Conv1d(128,64,1), Conv1d(64,32,1), Conv1d(32,1,ctx)
    w = _xavier(next(keys), (64, 128), 128, 64)
    p["aw1"], p["ab1"] = w.T, jnp.full((1, 64), 0.1, jnp.float32)
    w = _xavier(next(keys), (32, 64), 64, 32)
    p["aw2"], p["ab2"] = w.T, jnp.full((1, 32), 0.1, jnp.float32)
    w = _xavier(next(keys), (1, 32, HLC_CTX_LEN), 32 * HLC_CTX_LEN, HLC_CTX_LEN)
    p["acw"] = jnp.transpose(w, (2, 1, 0))                 # (CTX, 32, 1)
    p["acb"] = jnp.full((1, 1), 0.1, jnp.float32)
    # HLNet branches: score (s), holistic (h), localized (l)
    for b in ("s", "h", "l"):
        w = _xavier(next(keys), (32, 128), 128, 32)        # graph conv 1 weight
        p[f"{b}_g1w"] = w.T
        p[f"{b}_g1b"] = jnp.full((1, 32), 0.1, jnp.float32)
        w = _xavier(next(keys), (32, 128, PROJ_K), 128 * PROJ_K, 32 * PROJ_K)
        p[f"{b}_p1w"] = jnp.transpose(w, (2, 1, 0))        # (PROJ_K, 128, 32)
        p[f"{b}_p1b"] = jnp.full((1, 32), 0.1, jnp.float32)
        w = _xavier(next(keys), (32, 32), 32, 32)          # graph conv 2 weight
        p[f"{b}_g2w"] = w.T
        p[f"{b}_g2b"] = jnp.full((1, 32), 0.1, jnp.float32)
    # HLNet classifier: Linear(96, 1)
    w = _xavier(next(keys), (1, 96), 96, 1)
    p["clw"] = w.T                                         # (96, 1)
    p["clb"] = jnp.full((1, 1), 0.1, jnp.float32)
    return p


def _pack_params(p):
    """Pack per-branch / per-tap weights into the fused layouts the kernel uses."""
    bf16 = jnp.bfloat16
    g1w = jnp.concatenate([p["s_g1w"], p["h_g1w"], p["l_g1w"]], axis=1)     # (128,96)
    wp = jnp.concatenate([p["s_p1w"], p["h_p1w"], p["l_p1w"]], axis=2)      # (5,128,96)
    wbig = jnp.zeros((128, _WBIG_COLS), jnp.float32)
    wbig = wbig.at[:, _G1_OFF:_G1_OFF + 96].set(g1w)
    for k in range(PROJ_K):
        wbig = wbig.at[:, _TAP_OFF[k]:_TAP_OFF[k] + 96].set(wp[k])
    wbig = wbig.at[:, _AW1_OFF:_AW1_OFF + 64].set(p["aw1"])

    b1 = jnp.concatenate([p["s_g1b"] + p["s_p1b"],
                          p["h_g1b"] + p["h_p1b"],
                          p["l_g1b"] + p["l_p1b"]], axis=1)                 # (1,96)
    w2 = jnp.zeros((96, 96), jnp.float32)                                   # block-diag
    for i, b in enumerate(("s", "h", "l")):
        w2 = w2.at[32 * i:32 * i + 32, 32 * i:32 * i + 32].set(p[f"{b}_g2w"])
    b2 = jnp.concatenate([p["s_g2b"], p["h_g2b"], p["l_g2b"]], axis=1)      # (1,96)
    acw = p["acw"].reshape(1, HLC_CTX_LEN * 32)                             # (1,160)
    clw = p["clw"].T                                                        # (1,96)
    return [p["fw1"].astype(bf16), p["fb1"],
            p["fw2"].astype(bf16), p["fb2"],
            wbig.astype(bf16), p["ab1"],
            p["aw2"].astype(bf16), p["ab2"],
            acw, p["acb"],
            b1, w2.astype(bf16), b2, clw, p["clb"]]


def _build_constants(bt, t):
    """Data-independent constants built once in the wrapper (not per grid step)."""
    n = bt * t
    idx = jnp.arange(n, dtype=jnp.int32)
    tpos = (idx % t).astype(jnp.float32).reshape(n, 1)          # time pos per row
    same = (idx // t)[:, None] == (idx // t)[None, :]
    hol_mask = jnp.where(same, 0.0, NEG_INF).astype(jnp.float32)  # additive mask
    return tpos, hol_mask


def _const_spec(w):
    nd = w.ndim
    return pl.BlockSpec(w.shape, lambda b, _nd=nd: (0,) * _nd)


def _pick_bt(batch, t):
    # ~256 rows/step keeps the (n,n) holistic softmax inside v7x/v5e scoped
    # VMEM while filling the MXU; keep >= 2 grid steps when possible so both
    # v7x TensorCores get work.  On v6e (128 MiB VMEM) this can be 512-1024.
    target_rows = 256
    bt = max(1, min(target_rows // max(t, 1), -(-batch // 2)))
    mult = 8 // math.gcd(t, 8)            # make bt*t a multiple of 8 (sublanes)
    bt = -(-bt // mult) * mult
    return bt


def pengwu_forward(x, params):
    """Returns (x_hl, x_hlc) with shapes (B, T, 1), (B, T, 1)."""
    B, T, D = x.shape
    bt = _pick_bt(B, T)
    n_blocks = -(-B // bt)
    bp = n_blocks * bt
    if bp != B:                               # zero-pad the batch (safe: finite)
        x = jnp.concatenate([x, jnp.zeros((bp - B, T, D), x.dtype)], axis=0)
    n = bt * T
    x2d = x.reshape(bp * T, D)

    tpos, hol_mask = _build_constants(bt, T)
    consts = [tpos, hol_mask]
    weights = _pack_params(params)

    in_specs = [pl.BlockSpec((n, D), lambda b: (b, 0))]
    in_specs += [_const_spec(w) for w in consts + weights]
    # Lane-dense outputs: one (1, 1, n) row per grid step, reshaped in the wrapper.
    out_specs = (pl.BlockSpec((1, 1, n), lambda b: (b, 0, 0)),
                 pl.BlockSpec((1, 1, n), lambda b: (b, 0, 0)))
    out_shape = (jax.ShapeDtypeStruct((n_blocks, 1, n), jnp.float32),
                 jax.ShapeDtypeStruct((n_blocks, 1, n), jnp.float32))

    kernel = functools.partial(pengwu_kernel, bt, T)
    hl, hlc = pl.pallas_call(
        kernel,
        grid=(n_blocks,),
        in_specs=in_specs,
        out_specs=out_specs,
        out_shape=out_shape,
        compiler_params=pltpu.CompilerParams(dimension_semantics=("parallel",)),
    )(x2d, *consts, *weights)

    hl = hl.reshape(bp, T, 1)[:B]
    hlc = hlc.reshape(bp, T, 1)[:B]
    return hl, hlc


if __name__ == "__main__":
    key = jax.random.PRNGKey(0)
    k_param, k_x = jax.random.split(key)
    params = init_params(k_param, FEATURE_DIM)

    B, T = 2, 8
    x = jax.random.normal(k_x, (B, T, FEATURE_DIM), jnp.float32)

    x_hl, x_hlc = pengwu_forward(x, params)
    jax.block_until_ready((x_hl, x_hlc))
    assert x_hl.shape == (B, T, 1) and x_hlc.shape == (B, T, 1)
    assert bool(jnp.all(jnp.isfinite(x_hl))) and bool(jnp.all(jnp.isfinite(x_hlc)))
    print("KERNEL_OK")
</pallas_src>

<mosaic_0001>
module attributes {stable_mosaic.version = 11 : i64} {
  func.func @pengwu_kernel(%arg0: i32, %arg1: memref<8x32xf32, #tpu.memory_space<vmem>>, %arg2: memref<8x1xf32, #tpu.memory_space<vmem>>, %arg3: memref<8x8xf32, #tpu.memory_space<vmem>>, %arg4: memref<32x512xbf16, #tpu.memory_space<vmem>>, %arg5: memref<1x512xf32, #tpu.memory_space<vmem>>, %arg6: memref<512x128xbf16, #tpu.memory_space<vmem>>, %arg7: memref<1x128xf32, #tpu.memory_space<vmem>>, %arg8: memref<128x896xbf16, #tpu.memory_space<vmem>>, %arg9: memref<1x64xf32, #tpu.memory_space<vmem>>, %arg10: memref<64x32xbf16, #tpu.memory_space<vmem>>, %arg11: memref<1x32xf32, #tpu.memory_space<vmem>>, %arg12: memref<1x160xf32, #tpu.memory_space<vmem>>, %arg13: memref<1x1xf32, #tpu.memory_space<vmem>>, %arg14: memref<1x96xf32, #tpu.memory_space<vmem>>, %arg15: memref<96x96xbf16, #tpu.memory_space<vmem>>, %arg16: memref<1x96xf32, #tpu.memory_space<vmem>>, %arg17: memref<1x96xf32, #tpu.memory_space<vmem>>, %arg18: memref<1x1xf32, #tpu.memory_space<vmem>>, %arg19: memref<1x1x8xf32, #tpu.memory_space<vmem>>, %arg20: memref<1x1x8xf32, #tpu.memory_space<vmem>>) attributes {dimension_semantics = [#tpu.dimension_semantics<parallel>], iteration_bounds = array<i64: 2>, scalar_prefetch = 0 : i64, scratch_operands = 0 : i64, tpu.core_type = #tpu.core_type<tc>, window_params = [{transform_indices = @transform_0, window_bounds = array<i64: 8, 32>}, {pipeline_mode = #tpu.pipeline_mode<synchronous>, transform_indices = @transform_1, window_bounds = array<i64: 8, 1>}, {pipeline_mode = #tpu.pipeline_mode<synchronous>, transform_indices = @transform_2, window_bounds = array<i64: 8, 8>}, {pipeline_mode = #tpu.pipeline_mode<synchronous>, transform_indices = @transform_3, window_bounds = array<i64: 32, 512>}, {pipeline_mode = #tpu.pipeline_mode<synchronous>, transform_indices = @transform_4, window_bounds = array<i64: 1, 512>}, {pipeline_mode = #tpu.pipeline_mode<synchronous>, transform_indices = @transform_5, window_bounds = array<i64: 512, 128>}, {pipeline_mode = #tpu.pipeline_mode<synchronous>, transform_indices = @transform_6, window_bounds = array<i64: 1, 128>}, {pipeline_mode = #tpu.pipeline_mode<synchronous>, transform_indices = @transform_7, window_bounds = array<i64: 128, 896>}, {pipeline_mode = #tpu.pipeline_mode<synchronous>, transform_indices = @transform_8, window_bounds = array<i64: 1, 64>}, {pipeline_mode = #tpu.pipeline_mode<synchronous>, transform_indices = @transform_9, window_bounds = array<i64: 64, 32>}, {pipeline_mode = #tpu.pipeline_mode<synchronous>, transform_indices = @transform_10, window_bounds = array<i64: 1, 32>}, {pipeline_mode = #tpu.pipeline_mode<synchronous>, transform_indices = @transform_11, window_bounds = array<i64: 1, 160>}, {pipeline_mode = #tpu.pipeline_mode<synchronous>, transform_indices = @transform_12, window_bounds = array<i64: 1, 1>}, {pipeline_mode = #tpu.pipeline_mode<synchronous>, transform_indices = @transform_13, window_bounds = array<i64: 1, 96>}, {pipeline_mode = #tpu.pipeline_mode<synchronous>, transform_indices = @transform_14, window_bounds = array<i64: 96, 96>}, {pipeline_mode = #tpu.pipeline_mode<synchronous>, transform_indices = @transform_15, window_bounds = array<i64: 1, 96>}, {pipeline_mode = #tpu.pipeline_mode<synchronous>, transform_indices = @transform_16, window_bounds = array<i64: 1, 96>}, {pipeline_mode = #tpu.pipeline_mode<synchronous>, transform_indices = @transform_17, window_bounds = array<i64: 1, 1>}, {transform_indices = @transform_18, window_bounds = array<i64: 1, 1, 8>}, {transform_indices = @transform_19, window_bounds = array<i64: 1, 1, 8>}]} {
    %c0 = arith.constant 0 : index
    %c0_0 = arith.constant 0 : index
    %0 = vector.load %arg2[%c0, %c0_0] : memref<8x1xf32, #tpu.memory_space<vmem>>, vector<8x1xf32>
    %c0_1 = arith.constant 0 : index
    %c0_2 = arith.constant 0 : index
    %1 = vector.load %arg1[%c0_1, %c0_2] : memref<8x32xf32, #tpu.memory_space<vmem>>, vector<8x32xf32>
    %2 = arith.truncf %1 : vector<8x32xf32> to vector<8x32xbf16>
    %c0_3 = arith.constant 0 : index
    %c0_4 = arith.constant 0 : index
    %3 = vector.load %arg4[%c0_3, %c0_4] : memref<32x512xbf16, #tpu.memory_space<vmem>>, vector<32x512xbf16>
    %cst = arith.constant dense<0.000000e+00> : vector<8x512xf32>
    %4 = tpu.matmul %2, %3, %cst {dimension_numbers = #tpu.dot_dimension_numbers<[1], [0], [0], [1], [0, 0, 1, 1], [], []>} : vector<8x32xbf16>, vector<32x512xbf16>, vector<8x512xf32> -> vector<8x512xf32>
    %c0_5 = arith.constant 0 : index
    %c0_6 = arith.constant 0 : index
    %5 = vector.load %arg5[%c0_5, %c0_6] : memref<1x512xf32, #tpu.memory_space<vmem>>, vector<1x512xf32>
    %6 = vector.broadcast %5 : vector<1x512xf32> to vector<8x512xf32>
    %7 = arith.addf %4, %6 : vector<8x512xf32>
    %cst_7 = arith.constant 0.000000e+00 : f32
    %8 = vector.broadcast %cst_7 : f32 to vector<8x512xf32>
    %9 = arith.maximumf %7, %8 : vector<8x512xf32>
    %10 = arith.truncf %9 : vector<8x512xf32> to vector<8x512xbf16>
    %c0_8 = arith.constant 0 : index
    %c0_9 = arith.constant 0 : index
    %11 = vector.load %arg6[%c0_8, %c0_9] : memref<512x128xbf16, #tpu.memory_space<vmem>>, vector<512x128xbf16>
    %cst_10 = arith.constant dense<0.000000e+00> : vector<8x128xf32>
    %12 = tpu.matmul %10, %11, %cst_10 {dimension_numbers = #tpu.dot_dimension_numbers<[1], [0], [0], [1], [0, 0, 1, 1], [], []>} : vector<8x512xbf16>, vector<512x128xbf16>, vector<8x128xf32> -> vector<8x128xf32>
    %c0_11 = arith.constant 0 : index
    %c0_12 = arith.constant 0 : index
    %13 = vector.load %arg7[%c0_11, %c0_12] : memref<1x128xf32, #tpu.memory_space<vmem>>, vector<1x128xf32>
    %14 = vector.broadcast %13 : vector<1x128xf32> to vector<8x128xf32>
    %15 = arith.addf %12, %14 : vector<8x128xf32>
    %cst_13 = arith.constant 0.000000e+00 : f32
    %16 = vector.broadcast %cst_13 : f32 to vector<8x128xf32>
    %17 = arith.maximumf %15, %16 : vector<8x128xf32>
    %18 = arith.truncf %17 : vector<8x128xf32> to vector<8x128xbf16>
    %c0_14 = arith.constant 0 : index
    %c0_15 = arith.constant 0 : index
    %19 = vector.load %arg8[%c0_14, %c0_15] : memref<128x896xbf16, #tpu.memory_space<vmem>>, vector<128x896xbf16>
    %cst_16 = arith.constant dense<0.000000e+00> : vector<8x896xf32>
    %20 = tpu.matmul %18, %19, %cst_16 {dimension_numbers = #tpu.dot_dimension_numbers<[1], [0], [0], [1], [0, 0, 1, 1], [], []>} : vector<8x128xbf16>, vector<128x896xbf16>, vector<8x896xf32> -> vector<8x896xf32>
    %21 = vector.extract_strided_slice %20 {offsets = [0, 0], sizes = [8, 96], strides = [1, 1]} : vector<8x896xf32> to vector<8x96xf32>
    %22 = vector.extract_strided_slice %20 {offsets = [0, 768], sizes = [8, 64], strides = [1, 1]} : vector<8x896xf32> to vector<8x64xf32>
    %c0_17 = arith.constant 0 : index
    %c0_18 = arith.constant 0 : index
    %23 = vector.load %arg9[%c0_17, %c0_18] : memref<1x64xf32, #tpu.memory_space<vmem>>, vector<1x64xf32>
    %24 = vector.broadcast %23 : vector<1x64xf32> to vector<8x64xf32>
    %25 = arith.addf %22, %24 : vector<8x64xf32>
    %cst_19 = arith.constant 0.000000e+00 : f32
    %26 = vector.broadcast %cst_19 : f32 to vector<8x64xf32>
    %27 = arith.maximumf %25, %26 : vector<8x64xf32>
    %28 = arith.truncf %27 : vector<8x64xf32> to vector<8x64xbf16>
    %c0_20 = arith.constant 0 : index
    %c0_21 = arith.constant 0 : index
    %29 = vector.load %arg10[%c0_20, %c0_21] : memref<64x32xbf16, #tpu.memory_space<vmem>>, vector<64x32xbf16>
    %cst_22 = arith.constant dense<0.000000e+00> : vector<8x32xf32>
    %30 = tpu.matmul %28, %29, %cst_22 {dimension_numbers = #tpu.dot_dimension_numbers<[1], [0], [0], [1], [0, 0, 1, 1], [], []>} : vector<8x64xbf16>, vector<64x32xbf16>, vector<8x32xf32> -> vector<8x32xf32>
    %c0_23 = arith.constant 0 : index
    %c0_24 = arith.constant 0 : index
    %31 = vector.load %arg11[%c0_23, %c0_24] : memref<1x32xf32, #tpu.memory_space<vmem>>, vector<1x32xf32>
    %32 = vector.broadcast %31 : vector<1x32xf32> to vector<8x32xf32>
    %33 = arith.addf %30, %32 : vector<8x32xf32>
    %cst_25 = arith.constant 0.000000e+00 : f32
    %34 = vector.broadcast %cst_25 : f32 to vector<8x32xf32>
    %35 = arith.maximumf %33, %34 : vector<8x32xf32>
    %c4_i32 = arith.constant 4 : i32
    %36 = tpu.dynamic_rotate %35 by %c4_i32 dim 0 : vector<8x32xf32>, i32 -> vector<8x32xf32>
    %cst_26 = arith.constant 4.000000e+00 : f32
    %37 = vector.broadcast %cst_26 : f32 to vector<8x1xf32>
    %38 = arith.cmpf oge, %0, %37 : vector<8x1xf32>
    %cst_27 = arith.constant 1.000000e+00 : f32
    %cst_28 = arith.constant 0.000000e+00 : f32
    %39 = vector.broadcast %cst_27 : f32 to vector<8x1xf32>
    %40 = vector.broadcast %cst_28 : f32 to vector<8x1xf32>
    %41 = arith.select %38, %39, %40 : vector<8x1xi1>, vector<8x1xf32>
    %42 = vector.broadcast %41 : vector<8x1xf32> to vector<8x32xf32>
    %43 = arith.mulf %36, %42 : vector<8x32xf32>
    %c3_i32 = arith.constant 3 : i32
    %44 = tpu.dynamic_rotate %35 by %c3_i32 dim 0 : vector<8x32xf32>, i32 -> vector<8x32xf32>
    %cst_29 = arith.constant 3.000000e+00 : f32
    %45 = vector.broadcast %cst_29 : f32 to vector<8x1xf32>
    %46 = arith.cmpf oge, %0, %45 : vector<8x1xf32>
    %cst_30 = arith.constant 1.000000e+00 : f32
    %cst_31 = arith.constant 0.000000e+00 : f32
    %47 = vector.broadcast %cst_30 : f32 to vector<8x1xf32>
    %48 = vector.broadcast %cst_31 : f32 to vector<8x1xf32>
    %49 = arith.select %46, %47, %48 : vector<8x1xi1>, vector<8x1xf32>
    %50 = vector.broadcast %49 : vector<8x1xf32> to vector<8x32xf32>
    %51 = arith.mulf %44, %50 : vector<8x32xf32>
    %c2_i32 = arith.constant 2 : i32
    %52 = tpu.dynamic_rotate %35 by %c2_i32 dim 0 : vector<8x32xf32>, i32 -> vector<8x32xf32>
    %cst_32 = arith.constant 2.000000e+00 : f32
    %53 = vector.broadcast %cst_32 : f32 to vector<8x1xf32>
    %54 = arith.cmpf oge, %0, %53 : vector<8x1xf32>
    %cst_33 = arith.constant 1.000000e+00 : f32
    %cst_34 = arith.constant 0.000000e+00 : f32
    %55 = vector.broadcast %cst_33 : f32 to vector<8x1xf32>
    %56 = vector.broadcast %cst_34 : f32 to vector<8x1xf32>
    %57 = arith.select %54, %55, %56 : vector<8x1xi1>, vector<8x1xf32>
    %58 = vector.broadcast %57 : vector<8x1xf32> to vector<8x32xf32>
    %59 = arith.mulf %52, %58 : vector<8x32xf32>
    %c1_i32 = arith.constant 1 : i32
    %60 = tpu.dynamic_rotate %35 by %c1_i32 dim 0 : vector<8x32xf32>, i32 -> vector<8x32xf32>
    %cst_35 = arith.constant 1.000000e+00 : f32
    %61 = vector.broadcast %cst_35 : f32 to vector<8x1xf32>
    %62 = arith.cmpf oge, %0, %61 : vector<8x1xf32>
    %cst_36 = arith.constant 1.000000e+00 : f32
    %cst_37 = arith.constant 0.000000e+00 : f32
    %63 = vector.broadcast %cst_36 : f32 to vector<8x1xf32>
    %64 = vector.broadcast %cst_37 : f32 to vector<8x1xf32>
    %65 = arith.select %62, %63, %64 : vector<8x1xi1>, vector<8x1xf32>
    %66 = vector.broadcast %65 : vector<8x1xf32> to vector<8x32xf32>
    %67 = arith.mulf %60, %66 : vector<8x32xf32>
    %68 = tpu.concatenate %43, %51, %59, %67, %35 in 1 : vector<8x32xf32>, vector<8x32xf32>, vector<8x32xf32>, vector<8x32xf32>, vector<8x32xf32> -> vector<8x160xf32>
    %c0_38 = arith.constant 0 : index
    %c0_39 = arith.constant 0 : index
    %69 = vector.load %arg12[%c0_38, %c0_39] : memref<1x160xf32, #tpu.memory_space<vmem>>, vector<1x160xf32>
    %cst_40 = arith.constant dense<0.000000e+00> : vector<1x8xf32>
    %70 = tpu.matmul %69, %68, %cst_40 {dimension_numbers = #tpu.dot_dimension_numbers<[1], [1], [0], [0], [0, 0, 1, 0], [], []>} : vector<1x160xf32>, vector<8x160xf32>, vector<1x8xf32> -> vector<1x8xf32>
    %c0_41 = arith.constant 0 : index
    %c0_42 = arith.constant 0 : index
    %71 = vector.load %arg13[%c0_41, %c0_42] : memref<1x1xf32, #tpu.memory_space<vmem>>, vector<1x1xf32>
    %72 = vector.broadcast %71 : vector<1x1xf32> to vector<1x8xf32>
    %73 = arith.addf %70, %72 : vector<1x8xf32>
    %74 = vector.shape_cast %73 : vector<1x8xf32> to vector<1x1x8xf32>
    %c0_43 = arith.constant 0 : index
    %c0_44 = arith.constant 0 : index
    %c0_45 = arith.constant 0 : index
    %75 = vector.load %arg20[%c0_43, %c0_44, %c0_45] : memref<1x1x8xf32, #tpu.memory_space<vmem>>, vector<1x1x8xf32>
    tpu.vector_store %arg20[%c0_43, %c0_44, %c0_45], %74 {strides = array<i32>} : memref<1x1x8xf32, #tpu.memory_space<vmem>>, vector<1x1x8xf32>,
    %76 = vector.extract_strided_slice %20 {offsets = [0, 384], sizes = [8, 96], strides = [1, 1]} : vector<8x896xf32> to vector<8x96xf32>
    %77 = vector.extract_strided_slice %20 {offsets = [0, 128], sizes = [8, 96], strides = [1, 1]} : vector<8x896xf32> to vector<8x96xf32>
    %c2_i32_46 = arith.constant 2 : i32
    %78 = tpu.dynamic_rotate %77 by %c2_i32_46 dim 0 : vector<8x96xf32>, i32 -> vector<8x96xf32>
    %cst_47 = arith.constant 2.000000e+00 : f32
    %79 = vector.broadcast %cst_47 : f32 to vector<8x1xf32>
    %80 = arith.cmpf oge, %0, %79 : vector<8x1xf32>
    %cst_48 = arith.constant 1.000000e+00 : f32
    %cst_49 = arith.constant 0.000000e+00 : f32
    %81 = vector.broadcast %cst_48 : f32 to vector<8x1xf32>
    %82 = vector.broadcast %cst_49 : f32 to vector<8x1xf32>
    %83 = arith.select %80, %81, %82 : vector<8x1xi1>, vector<8x1xf32>
    %84 = vector.broadcast %83 : vector<8x1xf32> to vector<8x96xf32>
    %85 = arith.mulf %78, %84 : vector<8x96xf32>
    %86 = arith.addf %76, %85 : vector<8x96xf32>
    %87 = vector.extract_strided_slice %20 {offsets = [0, 256], sizes = [8, 96], strides = [1, 1]} : vector<8x896xf32> to vector<8x96xf32>
    %c1_i32_50 = arith.constant 1 : i32
    %88 = tpu.dynamic_rotate %87 by %c1_i32_50 dim 0 : vector<8x96xf32>, i32 -> vector<8x96xf32>
    %cst_51 = arith.constant 1.000000e+00 : f32
    %89 = vector.broadcast %cst_51 : f32 to vector<8x1xf32>
    %90 = arith.cmpf oge, %0, %89 : vector<8x1xf32>
    %cst_52 = arith.constant 1.000000e+00 : f32
    %cst_53 = arith.constant 0.000000e+00 : f32
    %91 = vector.broadcast %cst_52 : f32 to vector<8x1xf32>
    %92 = vector.broadcast %cst_53 : f32 to vector<8x1xf32>
    %93 = arith.select %90, %91, %92 : vector<8x1xi1>, vector<8x1xf32>
    %94 = vector.broadcast %93 : vector<8x1xf32> to vector<8x96xf32>
    %95 = arith.mulf %88, %94 : vector<8x96xf32>
    %96 = arith.addf %86, %95 : vector<8x96xf32>
    %97 = vector.extract_strided_slice %20 {offsets = [0, 512], sizes = [8, 96], strides = [1, 1]} : vector<8x896xf32> to vector<8x96xf32>
    %c7_i32 = arith.constant 7 : i32
    %98 = tpu.dynamic_rotate %97 by %c7_i32 dim 0 : vector<8x96xf32>, i32 -> vector<8x96xf32>
    %cst_54 = arith.constant 6.000000e+00 : f32
    %99 = vector.broadcast %cst_54 : f32 to vector<8x1xf32>
    %100 = arith.cmpf ole, %0, %99 : vector<8x1xf32>
    %cst_55 = arith.constant 1.000000e+00 : f32
    %cst_56 = arith.constant 0.000000e+00 : f32
    %101 = vector.broadcast %cst_55 : f32 to vector<8x1xf32>
    %102 = vector.broadcast %cst_56 : f32 to vector<8x1xf32>
    %103 = arith.select %100, %101, %102 : vector<8x1xi1>, vector<8x1xf32>
    %104 = vector.broadcast %103 : vector<8x1xf32> to vector<8x96xf32>
    %105 = arith.mulf %98, %104 : vector<8x96xf32>
    %106 = arith.addf %96, %105 : vector<8x96xf32>
    %107 = vector.extract_strided_slice %20 {offsets = [0, 640], sizes = [8, 96], strides = [1, 1]} : vector<8x896xf32> to vector<8x96xf32>
    %c6_i32 = arith.constant 6 : i32
    %108 = tpu.dynamic_rotate %107 by %c6_i32 dim 0 : vector<8x96xf32>, i32 -> vector<8x96xf32>
    %cst_57 = arith.constant 5.000000e+00 : f32
    %109 = vector.broadcast %cst_57 : f32 to vector<8x1xf32>
    %110 = arith.cmpf ole, %0, %109 : vector<8x1xf32>
    %cst_58 = arith.constant 1.000000e+00 : f32
    %cst_59 = arith.constant 0.000000e+00 : f32
    %111 = vector.broadcast %cst_58 : f32 to vector<8x1xf32>
    %112 = vector.broadcast %cst_59 : f32 to vector<8x1xf32>
    %113 = arith.select %110, %111, %112 : vector<8x1xi1>, vector<8x1xf32>
    %114 = vector.broadcast %113 : vector<8x1xf32> to vector<8x96xf32>
    %115 = arith.mulf %108, %114 : vector<8x96xf32>
    %116 = arith.addf %106, %115 : vector<8x96xf32>
    %c0_60 = arith.constant 0 : index
    %c0_61 = arith.constant 0 : index
    %117 = vector.load %arg14[%c0_60, %c0_61] : memref<1x96xf32, #tpu.memory_space<vmem>>, vector<1x96xf32>
    %118 = vector.broadcast %117 : vector<1x96xf32> to vector<8x96xf32>
    %119 = arith.addf %116, %118 : vector<8x96xf32>
    %120 = arith.mulf %1, %1 : vector<8x32xf32>
    %cst_62 = arith.constant dense<0.000000e+00> : vector<8xf32>
    %121 = vector.multi_reduction <add>, %120, %cst_62 [1] : vector<8x32xf32> to vector<8xf32>
    %122 = vector.shape_cast %121 : vector<8xf32> to vector<8x1xf32>
    %cst_63 = arith.constant 9.99999996E-13 : f32
    %123 = vector.broadcast %cst_63 : f32 to vector<8x1xf32>
    %124 = arith.maximumf %122, %123 : vector<8x1xf32>
    %125 = math.rsqrt %124 : vector<8x1xf32>
    %126 = vector.broadcast %125 : vector<8x1xf32> to vector<8x32xf32>
    %127 = arith.mulf %1, %126 : vector<8x32xf32>
    %cst_64 = arith.constant dense<0.000000e+00> : vector<8x8xf32>
    %128 = tpu.matmul %127, %127, %cst_64 {dimension_numbers = #tpu.dot_dimension_numbers<[1], [1], [0], [0], [0, 0, 1, 0], [], []>} : vector<8x32xf32>, vector<8x32xf32>, vector<8x8xf32> -> vector<8x8xf32>
    %cst_65 = arith.constant 0.699999988 : f32
    %129 = vector.broadcast %cst_65 : f32 to vector<8x8xf32>
    %130 = arith.cmpf ogt, %128, %129 : vector<8x8xf32>
    %cst_66 = arith.constant 0.000000e+00 : f32
    %131 = vector.broadcast %cst_66 : f32 to vector<8x8xf32>
    %132 = arith.select %130, %128, %131 : vector<8x8xi1>, vector<8x8xf32>
    %c0_67 = arith.constant 0 : index
    %c0_68 = arith.constant 0 : index
    %133 = vector.load %arg3[%c0_67, %c0_68] : memref<8x8xf32, #tpu.memory_space<vmem>>, vector<8x8xf32>
    %134 = arith.addf %132, %133 : vector<8x8xf32>
    %cst_69 = arith.constant dense<0xFF800000> : vector<8xf32>
    %135 = vector.multi_reduction <maximumf>, %134, %cst_69 [1] : vector<8x8xf32> to vector<8xf32>
    %136 = vector.shape_cast %135 : vector<8xf32> to vector<8x1xf32>
    %137 = vector.broadcast %136 : vector<8x1xf32> to vector<8x8xf32>
    %138 = arith.subf %134, %137 : vector<8x8xf32>
    %139 = math.exp %138 : vector<8x8xf32>
    %cst_70 = arith.constant dense<0.000000e+00> : vector<8xf32>
    %140 = vector.multi_reduction <add>, %139, %cst_70 [1] : vector<8x8xf32> to vector<8xf32>
    %141 = vector.shape_cast %140 : vector<8xf32> to vector<8x1xf32>
    %cst_71 = arith.constant 1.000000e+00 : f32
    %142 = vector.broadcast %cst_71 : f32 to vector<8x1xf32>
    %143 = arith.divf %142, %141 : vector<8x1xf32>
    %144 = vector.broadcast %143 : vector<8x1xf32> to vector<8x8xf32>
    %145 = arith.mulf %139, %144 : vector<8x8xf32>
    %146 = arith.truncf %145 : vector<8x8xf32> to vector<8x8xbf16>
    %147 = vector.extract_strided_slice %21 {offsets = [0, 0], sizes = [8, 32], strides = [1, 1]} : vector<8x96xf32> to vector<8x32xf32>
    %148 = vector.shape_cast %147 : vector<8x32xf32> to vector<1x8x32xf32>
    %cst_72 = arith.constant dense<0.000000e+00> : vector<1x32xf32>
    %149 = vector.multi_reduction <add>, %148, %cst_72 [1] : vector<1x8x32xf32> to vector<1x32xf32>
    %150 = vector.shape_cast %149 : vector<1x32xf32> to vector<1x1x32xf32>
    %cst_73 = arith.constant 8.000000e+00 : f32
    %151 = vector.broadcast %cst_73 : f32 to vector<1x1x32xf32>
    %152 = arith.divf %150, %151 : vector<1x1x32xf32>
    %153 = vector.shape_cast %152 : vector<1x1x32xf32> to vector<1x1x32xf32>
    %154 = vector.broadcast %153 : vector<1x1x32xf32> to vector<1x8x32xf32>
    %155 = vector.shape_cast %154 : vector<1x8x32xf32> to vector<8x32xf32>
    %156 = vector.extract_strided_slice %119 {offsets = [0, 0], sizes = [8, 32], strides = [1, 1]} : vector<8x96xf32> to vector<8x32xf32>
    %157 = arith.addf %155, %156 : vector<8x32xf32>
    %cst_74 = arith.constant 0.000000e+00 : f32
    %158 = vector.broadcast %cst_74 : f32 to vector<8x32xf32>
    %159 = arith.maximumf %157, %158 : vector<8x32xf32>
    %160 = vector.extract_strided_slice %21 {offsets = [0, 32], sizes = [8, 32], strides = [1, 1]} : vector<8x96xf32> to vector<8x32xf32>
    %161 = arith.truncf %160 : vector<8x32xf32> to vector<8x32xbf16>
    %cst_75 = arith.constant dense<0.000000e+00> : vector<8x32xf32>
    %162 = tpu.matmul %146, %161, %cst_75 {dimension_numbers = #tpu.dot_dimension_numbers<[1], [0], [0], [1], [0, 0, 1, 1], [], []>} : vector<8x8xbf16>, vector<8x32xbf16>, vector<8x32xf32> -> vector<8x32xf32>
    %163 = vector.extract_strided_slice %119 {offsets = [0, 32], sizes = [8, 32], strides = [1, 1]} : vector<8x96xf32> to vector<8x32xf32>
    %164 = arith.addf %162, %163 : vector<8x32xf32>
    %cst_76 = arith.constant 0.000000e+00 : f32
    %165 = vector.broadcast %cst_76 : f32 to vector<8x32xf32>
    %166 = arith.maximumf %164, %165 : vector<8x32xf32>
    %167 = vector.extract_strided_slice %21 {offsets = [0, 64], sizes = [8, 32], strides = [1, 1]} : vector<8x96xf32> to vector<8x32xf32>
    %c1_i32_77 = arith.constant 1 : i32
    %168 = tpu.dynamic_rotate %167 by %c1_i32_77 dim 0 : vector<8x32xf32>, i32 -> vector<8x32xf32>
    %cst_78 = arith.constant 1.000000e+00 : f32
    %169 = vector.broadcast %cst_78 : f32 to vector<8x1xf32>
    %170 = arith.cmpf oge, %0, %169 : vector<8x1xf32>
    %cst_79 = arith.constant 1.000000e+00 : f32
    %cst_80 = arith.constant 0.000000e+00 : f32
    %171 = vector.broadcast %cst_79 : f32 to vector<8x1xf32>
    %172 = vector.broadcast %cst_80 : f32 to vector<8x1xf32>
    %173 = arith.select %170, %171, %172 : vector<8x1xi1>, vector<8x1xf32>
    %174 = vector.broadcast %173 : vector<8x1xf32> to vector<8x32xf32>
    %175 = arith.mulf %168, %174 : vector<8x32xf32>
    %c7_i32_81 = arith.constant 7 : i32
    %176 = tpu.dynamic_rotate %167 by %c7_i32_81 dim 0 : vector<8x32xf32>, i32 -> vector<8x32xf32>
    %cst_82 = arith.constant 6.000000e+00 : f32
    %177 = vector.broadcast %cst_82 : f32 to vector<8x1xf32>
    %178 = arith.cmpf ole, %0, %177 : vector<8x1xf32>
    %cst_83 = arith.constant 1.000000e+00 : f32
    %cst_84 = arith.constant 0.000000e+00 : f32
    %179 = vector.broadcast %cst_83 : f32 to vector<8x1xf32>
    %180 = vector.broadcast %cst_84 : f32 to vector<8x1xf32>
    %181 = arith.select %178, %179, %180 : vector<8x1xi1>, vector<8x1xf32>
    %182 = vector.broadcast %181 : vector<8x1xf32> to vector<8x32xf32>
    %183 = arith.mulf %176, %182 : vector<8x32xf32>
    %184 = arith.addf %175, %183 : vector<8x32xf32>
    %cst_85 = arith.constant 0.36787945 : f32
    %185 = vector.broadcast %cst_85 : f32 to vector<8x32xf32>
    %186 = arith.mulf %185, %184 : vector<8x32xf32>
    %187 = arith.addf %167, %186 : vector<8x32xf32>
    %c2_i32_86 = arith.constant 2 : i32
    %188 = tpu.dynamic_rotate %167 by %c2_i32_86 dim 0 : vector<8x32xf32>, i32 -> vector<8x32xf32>
    %cst_87 = arith.constant 2.000000e+00 : f32
    %189 = vector.broadcast %cst_87 : f32 to vector<8x1xf32>
    %190 = arith.cmpf oge, %0, %189 : vector<8x1xf32>
    %cst_88 = arith.constant 1.000000e+00 : f32
    %cst_89 = arith.constant 0.000000e+00 : f32
    %191 = vector.broadcast %cst_88 : f32 to vector<8x1xf32>
    %192 = vector.broadcast %cst_89 : f32 to vector<8x1xf32>
    %193 = arith.select %190, %191, %192 : vector<8x1xi1>, vector<8x1xf32>
    %194 = vector.broadcast %193 : vector<8x1xf32> to vector<8x32xf32>
    %195 = arith.mulf %188, %194 : vector<8x32xf32>
    %c6_i32_90 = arith.constant 6 : i32
    %196 = tpu.dynamic_rotate %167 by %c6_i32_90 dim 0 : vector<8x32xf32>, i32 -> vector<8x32xf32>
    %cst_91 = arith.constant 5.000000e+00 : f32
    %197 = vector.broadcast %cst_91 : f32 to vector<8x1xf32>
    %198 = arith.cmpf ole, %0, %197 : vector<8x1xf32>
    %cst_92 = arith.constant 1.000000e+00 : f32
    %cst_93 = arith.constant 0.000000e+00 : f32
    %199 = vector.broadcast %cst_92 : f32 to vector<8x1xf32>
    %200 = vector.broadcast %cst_93 : f32 to vector<8x1xf32>
    %201 = arith.select %198, %199, %200 : vector<8x1xi1>, vector<8x1xf32>
    %202 = vector.broadcast %201 : vector<8x1xf32> to vector<8x32xf32>
    %203 = arith.mulf %196, %202 : vector<8x32xf32>
    %204 = arith.addf %195, %203 : vector<8x32xf32>
    %cst_94 = arith.constant 0.135335281 : f32
    %205 = vector.broadcast %cst_94 : f32 to vector<8x32xf32>
    %206 = arith.mulf %205, %204 : vector<8x32xf32>
    %207 = arith.addf %187, %206 : vector<8x32xf32>
    %c3_i32_95 = arith.constant 3 : i32
    %208 = tpu.dynamic_rotate %167 by %c3_i32_95 dim 0 : vector<8x32xf32>, i32 -> vector<8x32xf32>
    %cst_96 = arith.constant 3.000000e+00 : f32
    %209 = vector.broadcast %cst_96 : f32 to vector<8x1xf32>
    %210 = arith.cmpf oge, %0, %209 : vector<8x1xf32>
    %cst_97 = arith.constant 1.000000e+00 : f32
    %cst_98 = arith.constant 0.000000e+00 : f32
    %211 = vector.broadcast %cst_97 : f32 to vector<8x1xf32>
    %212 = vector.broadcast %cst_98 : f32 to vector<8x1xf32>
    %213 = arith.select %210, %211, %212 : vector<8x1xi1>, vector<8x1xf32>
    %214 = vector.broadcast %213 : vector<8x1xf32> to vector<8x32xf32>
    %215 = arith.mulf %208, %214 : vector<8x32xf32>
    %c5_i32 = arith.constant 5 : i32
    %216 = tpu.dynamic_rotate %167 by %c5_i32 dim 0 : vector<8x32xf32>, i32 -> vector<8x32xf32>
    %cst_99 = arith.constant 4.000000e+00 : f32
    %217 = vector.broadcast %cst_99 : f32 to vector<8x1xf32>
    %218 = arith.cmpf ole, %0, %217 : vector<8x1xf32>
    %cst_100 = arith.constant 1.000000e+00 : f32
    %cst_101 = arith.constant 0.000000e+00 : f32
    %219 = vector.broadcast %cst_100 : f32 to vector<8x1xf32>
    %220 = vector.broadcast %cst_101 : f32 to vector<8x1xf32>
    %221 = arith.select %218, %219, %220 : vector<8x1xi1>, vector<8x1xf32>
    %222 = vector.broadcast %221 : vector<8x1xf32> to vector<8x32xf32>
    %223 = arith.mulf %216, %222 : vector<8x32xf32>
    %224 = arith.addf %215, %223 : vector<8x32xf32>
    %cst_102 = arith.constant 0.0497870669 : f32
    %225 = vector.broadcast %cst_102 : f32 to vector<8x32xf32>
    %226 = arith.mulf %225, %224 : vector<8x32xf32>
    %227 = arith.addf %207, %226 : vector<8x32xf32>
    %c4_i32_103 = arith.constant 4 : i32
    %228 = tpu.dynamic_rotate %167 by %c4_i32_103 dim 0 : vector<8x32xf32>, i32 -> vector<8x32xf32>
    %cst_104 = arith.constant 4.000000e+00 : f32
    %229 = vector.broadcast %cst_104 : f32 to vector<8x1xf32>
    %230 = arith.cmpf oge, %0, %229 : vector<8x1xf32>
    %cst_105 = arith.constant 1.000000e+00 : f32
    %cst_106 = arith.constant 0.000000e+00 : f32
    %231 = vector.broadcast %cst_105 : f32 to vector<8x1xf32>
    %232 = vector.broadcast %cst_106 : f32 to vector<8x1xf32>
    %233 = arith.select %230, %231, %232 : vector<8x1xi1>, vector<8x1xf32>
    %234 = vector.broadcast %233 : vector<8x1xf32> to vector<8x32xf32>
    %235 = arith.mulf %228, %234 : vector<8x32xf32>
    %c4_i32_107 = arith.constant 4 : i32
    %236 = tpu.dynamic_rotate %167 by %c4_i32_107 dim 0 : vector<8x32xf32>, i32 -> vector<8x32xf32>
    %cst_108 = arith.constant 3.000000e+00 : f32
    %237 = vector.broadcast %cst_108 : f32 to vector<8x1xf32>
    %238 = arith.cmpf ole, %0, %237 : vector<8x1xf32>
    %cst_109 = arith.constant 1.000000e+00 : f32
    %cst_110 = arith.constant 0.000000e+00 : f32
    %239 = vector.broadcast %cst_109 : f32 to vector<8x1xf32>
    %240 = vector.broadcast %cst_110 : f32 to vector<8x1xf32>
    %241 = arith.select %238, %239, %240 : vector<8x1xi1>, vector<8x1xf32>
    %242 = vector.broadcast %241 : vector<8x1xf32> to vector<8x32xf32>
    %243 = arith.mulf %236, %242 : vector<8x32xf32>
    %244 = arith.addf %235, %243 : vector<8x32xf32>
    %cst_111 = arith.constant 0.0183156393 : f32
    %245 = vector.broadcast %cst_111 : f32 to vector<8x32xf32>
    %246 = arith.mulf %245, %244 : vector<8x32xf32>
    %247 = arith.addf %227, %246 : vector<8x32xf32>
    %c5_i32_112 = arith.constant 5 : i32
    %248 = tpu.dynamic_rotate %167 by %c5_i32_112 dim 0 : vector<8x32xf32>, i32 -> vector<8x32xf32>
    %cst_113 = arith.constant 5.000000e+00 : f32
    %249 = vector.broadcast %cst_113 : f32 to vector<8x1xf32>
    %250 = arith.cmpf oge, %0, %249 : vector<8x1xf32>
    %cst_114 = arith.constant 1.000000e+00 : f32
    %cst_115 = arith.constant 0.000000e+00 : f32
    %251 = vector.broadcast %cst_114 : f32 to vector<8x1xf32>
    %252 = vector.broadcast %cst_115 : f32 to vector<8x1xf32>
    %253 = arith.select %250, %251, %252 : vector<8x1xi1>, vector<8x1xf32>
    %254 = vector.broadcast %253 : vector<8x1xf32> to vector<8x32xf32>
    %255 = arith.mulf %248, %254 : vector<8x32xf32>
    %c3_i32_116 = arith.constant 3 : i32
    %256 = tpu.dynamic_rotate %167 by %c3_i32_116 dim 0 : vector<8x32xf32>, i32 -> vector<8x32xf32>
    %cst_117 = arith.constant 2.000000e+00 : f32
    %257 = vector.broadcast %cst_117 : f32 to vector<8x1xf32>
    %258 = arith.cmpf ole, %0, %257 : vector<8x1xf32>
    %cst_118 = arith.constant 1.000000e+00 : f32
    %cst_119 = arith.constant 0.000000e+00 : f32
    %259 = vector.broadcast %cst_118 : f32 to vector<8x1xf32>
    %260 = vector.broadcast %cst_119 : f32 to vector<8x1xf32>
    %261 = arith.select %258, %259, %260 : vector<8x1xi1>, vector<8x1xf32>
    %262 = vector.broadcast %261 : vector<8x1xf32> to vector<8x32xf32>
    %263 = arith.mulf %256, %262 : vector<8x32xf32>
    %264 = arith.addf %255, %263 : vector<8x32xf32>
    %cst_120 = arith.constant 0.006737947 : f32
    %265 = vector.broadcast %cst_120 : f32 to vector<8x32xf32>
    %266 = arith.mulf %265, %264 : vector<8x32xf32>
    %267 = arith.addf %247, %266 : vector<8x32xf32>
    %c6_i32_121 = arith.constant 6 : i32
    %268 = tpu.dynamic_rotate %167 by %c6_i32_121 dim 0 : vector<8x32xf32>, i32 -> vector<8x32xf32>
    %cst_122 = arith.constant 6.000000e+00 : f32
    %269 = vector.broadcast %cst_122 : f32 to vector<8x1xf32>
    %270 = arith.cmpf oge, %0, %269 : vector<8x1xf32>
    %cst_123 = arith.constant 1.000000e+00 : f32
    %cst_124 = arith.constant 0.000000e+00 : f32
    %271 = vector.broadcast %cst_123 : f32 to vector<8x1xf32>
    %272 = vector.broadcast %cst_124 : f32 to vector<8x1xf32>
    %273 = arith.select %270, %271, %272 : vector<8x1xi1>, vector<8x1xf32>
    %274 = vector.broadcast %273 : vector<8x1xf32> to vector<8x32xf32>
    %275 = arith.mulf %268, %274 : vector<8x32xf32>
    %c2_i32_125 = arith.constant 2 : i32
    %276 = tpu.dynamic_rotate %167 by %c2_i32_125 dim 0 : vector<8x32xf32>, i32 -> vector<8x32xf32>
    %cst_126 = arith.constant 1.000000e+00 : f32
    %277 = vector.broadcast %cst_126 : f32 to vector<8x1xf32>
    %278 = arith.cmpf ole, %0, %277 : vector<8x1xf32>
    %cst_127 = arith.constant 1.000000e+00 : f32
    %cst_128 = arith.constant 0.000000e+00 : f32
    %279 = vector.broadcast %cst_127 : f32 to vector<8x1xf32>
    %280 = vector.broadcast %cst_128 : f32 to vector<8x1xf32>
    %281 = arith.select %278, %279, %280 : vector<8x1xi1>, vector<8x1xf32>
    %282 = vector.broadcast %281 : vector<8x1xf32> to vector<8x32xf32>
    %283 = arith.mulf %276, %282 : vector<8x32xf32>
    %284 = arith.addf %275, %283 : vector<8x32xf32>
    %cst_129 = arith.constant 0.00247875229 : f32
    %285 = vector.broadcast %cst_129 : f32 to vector<8x32xf32>
    %286 = arith.mulf %285, %284 : vector<8x32xf32>
    %287 = arith.addf %267, %286 : vector<8x32xf32>
    %c7_i32_130 = arith.constant 7 : i32
    %288 = tpu.dynamic_rotate %167 by %c7_i32_130 dim 0 : vector<8x32xf32>, i32 -> vector<8x32xf32>
    %cst_131 = arith.constant 7.000000e+00 : f32
    %289 = vector.broadcast %cst_131 : f32 to vector<8x1xf32>
    %290 = arith.cmpf oge, %0, %289 : vector<8x1xf32>
    %cst_132 = arith.constant 1.000000e+00 : f32
    %cst_133 = arith.constant 0.000000e+00 : f32
    %291 = vector.broadcast %cst_132 : f32 to vector<8x1xf32>
    %292 = vector.broadcast %cst_133 : f32 to vector<8x1xf32>
    %293 = arith.select %290, %291, %292 : vector<8x1xi1>, vector<8x1xf32>
    %294 = vector.broadcast %293 : vector<8x1xf32> to vector<8x32xf32>
    %295 = arith.mulf %288, %294 : vector<8x32xf32>
    %c1_i32_134 = arith.constant 1 : i32
    %296 = tpu.dynamic_rotate %167 by %c1_i32_134 dim 0 : vector<8x32xf32>, i32 -> vector<8x32xf32>
    %cst_135 = arith.constant 0.000000e+00 : f32
    %297 = vector.broadcast %cst_135 : f32 to vector<8x1xf32>
    %298 = arith.cmpf ole, %0, %297 : vector<8x1xf32>
    %cst_136 = arith.constant 1.000000e+00 : f32
    %cst_137 = arith.constant 0.000000e+00 : f32
    %299 = vector.broadcast %cst_136 : f32 to vector<8x1xf32>
    %300 = vector.broadcast %cst_137 : f32 to vector<8x1xf32>
    %301 = arith.select %298, %299, %300 : vector<8x1xi1>, vector<8x1xf32>
    %302 = vector.broadcast %301 : vector<8x1xf32> to vector<8x32xf32>
    %303 = arith.mulf %296, %302 : vector<8x32xf32>
    %304 = arith.addf %295, %303 : vector<8x32xf32>
    %cst_138 = arith.constant 9.118820e-04 : f32
    %305 = vector.broadcast %cst_138 : f32 to vector<8x32xf32>
    %306 = arith.mulf %305, %304 : vector<8x32xf32>
    %307 = arith.addf %287, %306 : vector<8x32xf32>
    %308 = vector.extract_strided_slice %119 {offsets = [0, 64], sizes = [8, 32], strides = [1, 1]} : vector<8x96xf32> to vector<8x32xf32>
    %309 = arith.addf %307, %308 : vector<8x32xf32>
    %cst_139 = arith.constant 0.000000e+00 : f32
    %310 = vector.broadcast %cst_139 : f32 to vector<8x32xf32>
    %311 = arith.maximumf %309, %310 : vector<8x32xf32>
    %312 = tpu.concatenate %159, %166, %311 in 1 : vector<8x32xf32>, vector<8x32xf32>, vector<8x32xf32> -> vector<8x96xf32>
    %313 = arith.truncf %312 : vector<8x96xf32> to vector<8x96xbf16>
    %c0_140 = arith.constant 0 : index
    %c0_141 = arith.constant 0 : index
    %314 = vector.load %arg15[%c0_140, %c0_141] : memref<96x96xbf16, #tpu.memory_space<vmem>>, vector<96x96xbf16>
    %cst_142 = arith.constant dense<0.000000e+00> : vector<8x96xf32>
    %315 = tpu.matmul %313, %314, %cst_142 {dimension_numbers = #tpu.dot_dimension_numbers<[1], [0], [0], [1], [0, 0, 1, 1], [], []>} : vector<8x96xbf16>, vector<96x96xbf16>, vector<8x96xf32> -> vector<8x96xf32>
    %c0_143 = arith.constant 0 : index
    %c0_144 = arith.constant 0 : index
    %316 = vector.load %arg16[%c0_143, %c0_144] : memref<1x96xf32, #tpu.memory_space<vmem>>, vector<1x96xf32>
    %317 = vector.extract_strided_slice %315 {offsets = [0, 0], sizes = [8, 32], strides = [1, 1]} : vector<8x96xf32> to vector<8x32xf32>
    %318 = vector.shape_cast %317 : vector<8x32xf32> to vector<1x8x32xf32>
    %cst_145 = arith.constant dense<0.000000e+00> : vector<1x32xf32>
    %319 = vector.multi_reduction <add>, %318, %cst_145 [1] : vector<1x8x32xf32> to vector<1x32xf32>
    %320 = vector.shape_cast %319 : vector<1x32xf32> to vector<1x1x32xf32>
    %cst_146 = arith.constant 8.000000e+00 : f32
    %321 = vector.broadcast %cst_146 : f32 to vector<1x1x32xf32>
    %322 = arith.divf %320, %321 : vector<1x1x32xf32>
    %323 = vector.shape_cast %322 : vector<1x1x32xf32> to vector<1x1x32xf32>
    %324 = vector.broadcast %323 : vector<1x1x32xf32> to vector<1x8x32xf32>
    %325 = vector.shape_cast %324 : vector<1x8x32xf32> to vector<8x32xf32>
    %326 = vector.extract_strided_slice %316 {offsets = [0, 0], sizes = [1, 32], strides = [1, 1]} : vector<1x96xf32> to vector<1x32xf32>
    %327 = vector.broadcast %326 : vector<1x32xf32> to vector<8x32xf32>
    %328 = arith.addf %325, %327 : vector<8x32xf32>
    %cst_147 = arith.constant 2.000000e+00 : f32
    %329 = vector.broadcast %cst_147 : f32 to vector<8x32xf32>
    %330 = arith.mulf %329, %328 : vector<8x32xf32>
    %cst_148 = arith.constant 0.000000e+00 : f32
    %331 = vector.broadcast %cst_148 : f32 to vector<8x32xf32>
    %332 = arith.maximumf %330, %331 : vector<8x32xf32>
    %333 = vector.extract_strided_slice %315 {offsets = [0, 32], sizes = [8, 32], strides = [1, 1]} : vector<8x96xf32> to vector<8x32xf32>
    %334 = arith.truncf %333 : vector<8x32xf32> to vector<8x32xbf16>
    %cst_149 = arith.constant dense<0.000000e+00> : vector<8x32xf32>
    %335 = tpu.matmul %146, %334, %cst_149 {dimension_numbers = #tpu.dot_dimension_numbers<[1], [0], [0], [1], [0, 0, 1, 1], [], []>} : vector<8x8xbf16>, vector<8x32xbf16>, vector<8x32xf32> -> vector<8x32xf32>
    %336 = vector.extract_strided_slice %316 {offsets = [0, 32], sizes = [1, 32], strides = [1, 1]} : vector<1x96xf32> to vector<1x32xf32>
    %337 = vector.broadcast %336 : vector<1x32xf32> to vector<8x32xf32>
    %338 = arith.addf %335, %337 : vector<8x32xf32>
    %cst_150 = arith.constant 2.000000e+00 : f32
    %339 = vector.broadcast %cst_150 : f32 to vector<8x32xf32>
    %340 = arith.mulf %339, %338 : vector<8x32xf32>
    %cst_151 = arith.constant 0.000000e+00 : f32
    %341 = vector.broadcast %cst_151 : f32 to vector<8x32xf32>
    %342 = arith.maximumf %340, %341 : vector<8x32xf32>
    %343 = vector.extract_strided_slice %315 {offsets = [0, 64], sizes = [8, 32], strides = [1, 1]} : vector<8x96xf32> to vector<8x32xf32>
    %c1_i32_152 = arith.constant 1 : i32
    %344 = tpu.dynamic_rotate %343 by %c1_i32_152 dim 0 : vector<8x32xf32>, i32 -> vector<8x32xf32>
    %cst_153 = arith.constant 1.000000e+00 : f32
    %345 = vector.broadcast %cst_153 : f32 to vector<8x1xf32>
    %346 = arith.cmpf oge, %0, %345 : vector<8x1xf32>
    %cst_154 = arith.constant 1.000000e+00 : f32
    %cst_155 = arith.constant 0.000000e+00 : f32
    %347 = vector.broadcast %cst_154 : f32 to vector<8x1xf32>
    %348 = vector.broadcast %cst_155 : f32 to vector<8x1xf32>
    %349 = arith.select %346, %347, %348 : vector<8x1xi1>, vector<8x1xf32>
    %350 = vector.broadcast %349 : vector<8x1xf32> to vector<8x32xf32>
    %351 = arith.mulf %344, %350 : vector<8x32xf32>
    %c7_i32_156 = arith.constant 7 : i32
    %352 = tpu.dynamic_rotate %343 by %c7_i32_156 dim 0 : vector<8x32xf32>, i32 -> vector<8x32xf32>
    %cst_157 = arith.constant 6.000000e+00 : f32
    %353 = vector.broadcast %cst_157 : f32 to vector<8x1xf32>
    %354 = arith.cmpf ole, %0, %353 : vector<8x1xf32>
    %cst_158 = arith.constant 1.000000e+00 : f32
    %cst_159 = arith.constant 0.000000e+00 : f32
    %355 = vector.broadcast %cst_158 : f32 to vector<8x1xf32>
    %356 = vector.broadcast %cst_159 : f32 to vector<8x1xf32>
    %357 = arith.select %354, %355, %356 : vector<8x1xi1>, vector<8x1xf32>
    %358 = vector.broadcast %357 : vector<8x1xf32> to vector<8x32xf32>
    %359 = arith.mulf %352, %358 : vector<8x32xf32>
    %360 = arith.addf %351, %359 : vector<8x32xf32>
    %cst_160 = arith.constant 0.36787945 : f32
    %361 = vector.broadcast %cst_160 : f32 to vector<8x32xf32>
    %362 = arith.mulf %361, %360 : vector<8x32xf32>
    %363 = arith.addf %343, %362 : vector<8x32xf32>
    %c2_i32_161 = arith.constant 2 : i32
    %364 = tpu.dynamic_rotate %343 by %c2_i32_161 dim 0 : vector<8x32xf32>, i32 -> vector<8x32xf32>
    %cst_162 = arith.constant 2.000000e+00 : f32
    %365 = vector.broadcast %cst_162 : f32 to vector<8x1xf32>
    %366 = arith.cmpf oge, %0, %365 : vector<8x1xf32>
    %cst_163 = arith.constant 1.000000e+00 : f32
    %cst_164 = arith.constant 0.000000e+00 : f32
    %367 = vector.broadcast %cst_163 : f32 to vector<8x1xf32>
    %368 = vector.broadcast %cst_164 : f32 to vector<8x1xf32>
    %369 = arith.select %366, %367, %368 : vector<8x1xi1>, vector<8x1xf32>
    %370 = vector.broadcast %369 : vector<8x1xf32> to vector<8x32xf32>
    %371 = arith.mulf %364, %370 : vector<8x32xf32>
    %c6_i32_165 = arith.constant 6 : i32
    %372 = tpu.dynamic_rotate %343 by %c6_i32_165 dim 0 : vector<8x32xf32>, i32 -> vector<8x32xf32>
    %cst_166 = arith.constant 5.000000e+00 : f32
    %373 = vector.broadcast %cst_166 : f32 to vector<8x1xf32>
    %374 = arith.cmpf ole, %0, %373 : vector<8x1xf32>
    %cst_167 = arith.constant 1.000000e+00 : f32
    %cst_168 = arith.constant 0.000000e+00 : f32
    %375 = vector.broadcast %cst_167 : f32 to vector<8x1xf32>
    %376 = vector.broadcast %cst_168 : f32 to vector<8x1xf32>
    %377 = arith.select %374, %375, %376 : vector<8x1xi1>, vector<8x1xf32>
    %378 = vector.broadcast %377 : vector<8x1xf32> to vector<8x32xf32>
    %379 = arith.mulf %372, %378 : vector<8x32xf32>
    %380 = arith.addf %371, %379 : vector<8x32xf32>
    %cst_169 = arith.constant 0.135335281 : f32
    %381 = vector.broadcast %cst_169 : f32 to vector<8x32xf32>
    %382 = arith.mulf %381, %380 : vector<8x32xf32>
    %383 = arith.addf %363, %382 : vector<8x32xf32>
    %c3_i32_170 = arith.constant 3 : i32
    %384 = tpu.dynamic_rotate %343 by %c3_i32_170 dim 0 : vector<8x32xf32>, i32 -> vector<8x32xf32>
    %cst_171 = arith.constant 3.000000e+00 : f32
    %385 = vector.broadcast %cst_171 : f32 to vector<8x1xf32>
    %386 = arith.cmpf oge, %0, %385 : vector<8x1xf32>
    %cst_172 = arith.constant 1.000000e+00 : f32
    %cst_173 = arith.constant 0.000000e+00 : f32
    %387 = vector.broadcast %cst_172 : f32 to vector<8x1xf32>
    %388 = vector.broadcast %cst_173 : f32 to vector<8x1xf32>
    %389 = arith.select %386, %387, %388 : vector<8x1xi1>, vector<8x1xf32>
    %390 = vector.broadcast %389 : vector<8x1xf32> to vector<8x32xf32>
    %391 = arith.mulf %384, %390 : vector<8x32xf32>
    %c5_i32_174 = arith.constant 5 : i32
    %392 = tpu.dynamic_rotate %343 by %c5_i32_174 dim 0 : vector<8x32xf32>, i32 -> vector<8x32xf32>
    %cst_175 = arith.constant 4.000000e+00 : f32
    %393 = vector.broadcast %cst_175 : f32 to vector<8x1xf32>
    %394 = arith.cmpf ole, %0, %393 : vector<8x1xf32>
    %cst_176 = arith.constant 1.000000e+00 : f32
    %cst_177 = arith.constant 0.000000e+00 : f32
    %395 = vector.broadcast %cst_176 : f32 to vector<8x1xf32>
    %396 = vector.broadcast %cst_177 : f32 to vector<8x1xf32>
    %397 = arith.select %394, %395, %396 : vector<8x1xi1>, vector<8x1xf32>
    %398 = vector.broadcast %397 : vector<8x1xf32> to vector<8x32xf32>
    %399 = arith.mulf %392, %398 : vector<8x32xf32>
    %400 = arith.addf %391, %399 : vector<8x32xf32>
    %cst_178 = arith.constant 0.0497870669 : f32
    %401 = vector.broadcast %cst_178 : f32 to vector<8x32xf32>
    %402 = arith.mulf %401, %400 : vector<8x32xf32>
    %403 = arith.addf %383, %402 : vector<8x32xf32>
    %c4_i32_179 = arith.constant 4 : i32
    %404 = tpu.dynamic_rotate %343 by %c4_i32_179 dim 0 : vector<8x32xf32>, i32 -> vector<8x32xf32>
    %cst_180 = arith.constant 4.000000e+00 : f32
    %405 = vector.broadcast %cst_180 : f32 to vector<8x1xf32>
    %406 = arith.cmpf oge, %0, %405 : vector<8x1xf32>
    %cst_181 = arith.constant 1.000000e+00 : f32
    %cst_182 = arith.constant 0.000000e+00 : f32
    %407 = vector.broadcast %cst_181 : f32 to vector<8x1xf32>
    %408 = vector.broadcast %cst_182 : f32 to vector<8x1xf32>
    %409 = arith.select %406, %407, %408 : vector<8x1xi1>, vector<8x1xf32>
    %410 = vector.broadcast %409 : vector<8x1xf32> to vector<8x32xf32>
    %411 = arith.mulf %404, %410 : vector<8x32xf32>
    %c4_i32_183 = arith.constant 4 : i32
    %412 = tpu.dynamic_rotate %343 by %c4_i32_183 dim 0 : vector<8x32xf32>, i32 -> vector<8x32xf32>
    %cst_184 = arith.constant 3.000000e+00 : f32
    %413 = vector.broadcast %cst_184 : f32 to vector<8x1xf32>
    %414 = arith.cmpf ole, %0, %413 : vector<8x1xf32>
    %cst_185 = arith.constant 1.000000e+00 : f32
    %cst_186 = arith.constant 0.000000e+00 : f32
    %415 = vector.broadcast %cst_185 : f32 to vector<8x1xf32>
    %416 = vector.broadcast %cst_186 : f32 to vector<8x1xf32>
    %417 = arith.select %414, %415, %416 : vector<8x1xi1>, vector<8x1xf32>
    %418 = vector.broadcast %417 : vector<8x1xf32> to vector<8x32xf32>
    %419 = arith.mulf %412, %418 : vector<8x32xf32>
    %420 = arith.addf %411, %419 : vector<8x32xf32>
    %cst_187 = arith.constant 0.0183156393 : f32
    %421 = vector.broadcast %cst_187 : f32 to vector<8x32xf32>
    %422 = arith.mulf %421, %420 : vector<8x32xf32>
    %423 = arith.addf %403, %422 : vector<8x32xf32>
    %c5_i32_188 = arith.constant 5 : i32
    %424 = tpu.dynamic_rotate %343 by %c5_i32_188 dim 0 : vector<8x32xf32>, i32 -> vector<8x32xf32>
    %cst_189 = arith.constant 5.000000e+00 : f32
    %425 = vector.broadcast %cst_189 : f32 to vector<8x1xf32>
    %426 = arith.cmpf oge, %0, %425 : vector<8x1xf32>
    %cst_190 = arith.constant 1.000000e+00 : f32
    %cst_191 = arith.constant 0.000000e+00 : f32
    %427 = vector.broadcast %cst_190 : f32 to vector<8x1xf32>
    %428 = vector.broadcast %cst_191 : f32 to vector<8x1xf32>
    %429 = arith.select %426, %427, %428 : vector<8x1xi1>, vector<8x1xf32>
    %430 = vector.broadcast %429 : vector<8x1xf32> to vector<8x32xf32>
    %431 = arith.mulf %424, %430 : vector<8x32xf32>
    %c3_i32_192 = arith.constant 3 : i32
    %432 = tpu.dynamic_rotate %343 by %c3_i32_192 dim 0 : vector<8x32xf32>, i32 -> vector<8x32xf32>
    %cst_193 = arith.constant 2.000000e+00 : f32
    %433 = vector.broadcast %cst_193 : f32 to vector<8x1xf32>
    %434 = arith.cmpf ole, %0, %433 : vector<8x1xf32>
    %cst_194 = arith.constant 1.000000e+00 : f32
    %cst_195 = arith.constant 0.000000e+00 : f32
    %435 = vector.broadcast %cst_194 : f32 to vector<8x1xf32>
    %436 = vector.broadcast %cst_195 : f32 to vector<8x1xf32>
    %437 = arith.select %434, %435, %436 : vector<8x1xi1>, vector<8x1xf32>
    %438 = vector.broadcast %437 : vector<8x1xf32> to vector<8x32xf32>
    %439 = arith.mulf %432, %438 : vector<8x32xf32>
    %440 = arith.addf %431, %439 : vector<8x32xf32>
    %cst_196 = arith.constant 0.006737947 : f32
    %441 = vector.broadcast %cst_196 : f32 to vector<8x32xf32>
    %442 = arith.mulf %441, %440 : vector<8x32xf32>
    %443 = arith.addf %423, %442 : vector<8x32xf32>
    %c6_i32_197 = arith.constant 6 : i32
    %444 = tpu.dynamic_rotate %343 by %c6_i32_197 dim 0 : vector<8x32xf32>, i32 -> vector<8x32xf32>
    %cst_198 = arith.constant 6.000000e+00 : f32
    %445 = vector.broadcast %cst_198 : f32 to vector<8x1xf32>
    %446 = arith.cmpf oge, %0, %445 : vector<8x1xf32>
    %cst_199 = arith.constant 1.000000e+00 : f32
    %cst_200 = arith.constant 0.000000e+00 : f32
    %447 = vector.broadcast %cst_199 : f32 to vector<8x1xf32>
    %448 = vector.broadcast %cst_200 : f32 to vector<8x1xf32>
    %449 = arith.select %446, %447, %448 : vector<8x1xi1>, vector<8x1xf32>
    %450 = vector.broadcast %449 : vector<8x1xf32> to vector<8x32xf32>
    %451 = arith.mulf %444, %450 : vector<8x32xf32>
    %c2_i32_201 = arith.constant 2 : i32
    %452 = tpu.dynamic_rotate %343 by %c2_i32_201 dim 0 : vector<8x32xf32>, i32 -> vector<8x32xf32>
    %cst_202 = arith.constant 1.000000e+00 : f32
    %453 = vector.broadcast %cst_202 : f32 to vector<8x1xf32>
    %454 = arith.cmpf ole, %0, %453 : vector<8x1xf32>
    %cst_203 = arith.constant 1.000000e+00 : f32
    %cst_204 = arith.constant 0.000000e+00 : f32
    %455 = vector.broadcast %cst_203 : f32 to vector<8x1xf32>
    %456 = vector.broadcast %cst_204 : f32 to vector<8x1xf32>
    %457 = arith.select %454, %455, %456 : vector<8x1xi1>, vector<8x1xf32>
    %458 = vector.broadcast %457 : vector<8x1xf32> to vector<8x32xf32>
    %459 = arith.mulf %452, %458 : vector<8x32xf32>
    %460 = arith.addf %451, %459 : vector<8x32xf32>
    %cst_205 = arith.constant 0.00247875229 : f32
    %461 = vector.broadcast %cst_205 : f32 to vector<8x32xf32>
    %462 = arith.mulf %461, %460 : vector<8x32xf32>
    %463 = arith.addf %443, %462 : vector<8x32xf32>
    %c7_i32_206 = arith.constant 7 : i32
    %464 = tpu.dynamic_rotate %343 by %c7_i32_206 dim 0 : vector<8x32xf32>, i32 -> vector<8x32xf32>
    %cst_207 = arith.constant 7.000000e+00 : f32
    %465 = vector.broadcast %cst_207 : f32 to vector<8x1xf32>
    %466 = arith.cmpf oge, %0, %465 : vector<8x1xf32>
    %cst_208 = arith.constant 1.000000e+00 : f32
    %cst_209 = arith.constant 0.000000e+00 : f32
    %467 = vector.broadcast %cst_208 : f32 to vector<8x1xf32>
    %468 = vector.broadcast %cst_209 : f32 to vector<8x1xf32>
    %469 = arith.select %466, %467, %468 : vector<8x1xi1>, vector<8x1xf32>
    %470 = vector.broadcast %469 : vector<8x1xf32> to vector<8x32xf32>
    %471 = arith.mulf %464, %470 : vector<8x32xf32>
    %c1_i32_210 = arith.constant 1 : i32
    %472 = tpu.dynamic_rotate %343 by %c1_i32_210 dim 0 : vector<8x32xf32>, i32 -> vector<8x32xf32>
    %cst_211 = arith.constant 0.000000e+00 : f32
    %473 = vector.broadcast %cst_211 : f32 to vector<8x1xf32>
    %474 = arith.cmpf ole, %0, %473 : vector<8x1xf32>
    %cst_212 = arith.constant 1.000000e+00 : f32
    %cst_213 = arith.constant 0.000000e+00 : f32
    %475 = vector.broadcast %cst_212 : f32 to vector<8x1xf32>
    %476 = vector.broadcast %cst_213 : f32 to vector<8x1xf32>
    %477 = arith.select %474, %475, %476 : vector<8x1xi1>, vector<8x1xf32>
    %478 = vector.broadcast %477 : vector<8x1xf32> to vector<8x32xf32>
    %479 = arith.mulf %472, %478 : vector<8x32xf32>
    %480 = arith.addf %471, %479 : vector<8x32xf32>
    %cst_214 = arith.constant 9.118820e-04 : f32
    %481 = vector.broadcast %cst_214 : f32 to vector<8x32xf32>
    %482 = arith.mulf %481, %480 : vector<8x32xf32>
    %483 = arith.addf %463, %482 : vector<8x32xf32>
    %484 = vector.extract_strided_slice %316 {offsets = [0, 64], sizes = [1, 32], strides = [1, 1]} : vector<1x96xf32> to vector<1x32xf32>
    %485 = vector.broadcast %484 : vector<1x32xf32> to vector<8x32xf32>
    %486 = arith.addf %483, %485 : vector<8x32xf32>
    %cst_215 = arith.constant 2.000000e+00 : f32
    %487 = vector.broadcast %cst_215 : f32 to vector<8x32xf32>
    %488 = arith.mulf %487, %486 : vector<8x32xf32>
    %cst_216 = arith.constant 0.000000e+00 : f32
    %489 = vector.broadcast %cst_216 : f32 to vector<8x32xf32>
    %490 = arith.maximumf %488, %489 : vector<8x32xf32>
    %491 = tpu.concatenate %332, %342, %490 in 1 : vector<8x32xf32>, vector<8x32xf32>, vector<8x32xf32> -> vector<8x96xf32>
    %c0_217 = arith.constant 0 : index
    %c0_218 = arith.constant 0 : index
    %492 = vector.load %arg17[%c0_217, %c0_218] : memref<1x96xf32, #tpu.memory_space<vmem>>, vector<1x96xf32>
    %cst_219 = arith.constant dense<0.000000e+00> : vector<1x8xf32>
    %493 = tpu.matmul %492, %491, %cst_219 {dimension_numbers = #tpu.dot_dimension_numbers<[1], [1], [0], [0], [0, 0, 1, 0], [], []>} : vector<1x96xf32>, vector<8x96xf32>, vector<1x8xf32> -> vector<1x8xf32>
    %c0_220 = arith.constant 0 : index
    %c0_221 = arith.constant 0 : index
    %494 = vector.load %arg18[%c0_220, %c0_221] : memref<1x1xf32, #tpu.memory_space<vmem>>, vector<1x1xf32>
    %495 = vector.broadcast %494 : vector<1x1xf32> to vector<1x8xf32>
    %496 = arith.addf %493, %495 : vector<1x8xf32>
    %497 = vector.shape_cast %496 : vector<1x8xf32> to vector<1x1x8xf32>
    %c0_222 = arith.constant 0 : index
    %c0_223 = arith.constant 0 : index
    %c0_224 = arith.constant 0 : index
    %498 = vector.load %arg19[%c0_222, %c0_223, %c0_224] : memref<1x1x8xf32, #tpu.memory_space<vmem>>, vector<1x1x8xf32>
    tpu.vector_store %arg19[%c0_222, %c0_223, %c0_224], %497 {strides = array<i32>} : memref<1x1x8xf32, #tpu.memory_space<vmem>>, vector<1x1x8xf32>,
    return
  }
  func.func @transform_0(%arg0: i32) -> (i32, i32) {
    %c0_i32 = arith.constant 0 : i32
    %c0_i32_0 = arith.constant 0 : i32
    return %arg0, %c0_i32 : i32, i32
  }
  func.func @transform_1(%arg0: i32) -> (i32, i32) {
    %c0_i32 = arith.constant 0 : i32
    %c0_i32_0 = arith.constant 0 : i32
    %c0_i32_1 = arith.constant 0 : i32
    return %c0_i32, %c0_i32_0 : i32, i32
  }
  func.func @transform_2(%arg0: i32) -> (i32, i32) {
    %c0_i32 = arith.constant 0 : i32
    %c0_i32_0 = arith.constant 0 : i32
    %c0_i32_1 = arith.constant 0 : i32
    return %c0_i32, %c0_i32_0 : i32, i32
  }
  func.func @transform_3(%arg0: i32) -> (i32, i32) {
    %c0_i32 = arith.constant 0 : i32
    %c0_i32_0 = arith.constant 0 : i32
    %c0_i32_1 = arith.constant 0 : i32
    return %c0_i32, %c0_i32_0 : i32, i32
  }
  func.func @transform_4(%arg0: i32) -> (i32, i32) {
    %c0_i32 = arith.constant 0 : i32
    %c0_i32_0 = arith.constant 0 : i32
    %c0_i32_1 = arith.constant 0 : i32
    return %c0_i32, %c0_i32_0 : i32, i32
  }
  func.func @transform_5(%arg0: i32) -> (i32, i32) {
    %c0_i32 = arith.constant 0 : i32
    %c0_i32_0 = arith.constant 0 : i32
    %c0_i32_1 = arith.constant 0 : i32
    return %c0_i32, %c0_i32_0 : i32, i32
  }
  func.func @transform_6(%arg0: i32) -> (i32, i32) {
    %c0_i32 = arith.constant 0 : i32
    %c0_i32_0 = arith.constant 0 : i32
    %c0_i32_1 = arith.constant 0 : i32
    return %c0_i32, %c0_i32_0 : i32, i32
  }
  func.func @transform_7(%arg0: i32) -> (i32, i32) {
    %c0_i32 = arith.constant 0 : i32
    %c0_i32_0 = arith.constant 0 : i32
    %c0_i32_1 = arith.constant 0 : i32
    return %c0_i32, %c0_i32_0 : i32, i32
  }
  func.func @transform_8(%arg0: i32) -> (i32, i32) {
    %c0_i32 = arith.constant 0 : i32
    %c0_i32_0 = arith.constant 0 : i32
    %c0_i32_1 = arith.constant 0 : i32
    return %c0_i32, %c0_i32_0 : i32, i32
  }
  func.func @transform_9(%arg0: i32) -> (i32, i32) {
    %c0_i32 = arith.constant 0 : i32
    %c0_i32_0 = arith.constant 0 : i32
    %c0_i32_1 = arith.constant 0 : i32
    return %c0_i32, %c0_i32_0 : i32, i32
  }
  func.func @transform_10(%arg0: i32) -> (i32, i32) {
    %c0_i32 = arith.constant 0 : i32
    %c0_i32_0 = arith.constant 0 : i32
    %c0_i32_1 = arith.constant 0 : i32
    return %c0_i32, %c0_i32_0 : i32, i32
  }
  func.func @transform_11(%arg0: i32) -> (i32, i32) {
    %c0_i32 = arith.constant 0 : i32
    %c0_i32_0 = arith.constant 0 : i32
    %c0_i32_1 = arith.constant 0 : i32
    return %c0_i32, %c0_i32_0 : i32, i32
  }
  func.func @transform_12(%arg0: i32) -> (i32, i32) {
    %c0_i32 = arith.constant 0 : i32
    %c0_i32_0 = arith.constant 0 : i32
    %c0_i32_1 = arith.constant 0 : i32
    return %c0_i32, %c0_i32_0 : i32, i32
  }
  func.func @transform_13(%arg0: i32) -> (i32, i32) {
    %c0_i32 = arith.constant 0 : i32
    %c0_i32_0 = arith.constant 0 : i32
    %c0_i32_1 = arith.constant 0 : i32
    return %c0_i32, %c0_i32_0 : i32, i32
  }
  func.func @transform_14(%arg0: i32) -> (i32, i32) {
    %c0_i32 = arith.constant 0 : i32
    %c0_i32_0 = arith.constant 0 : i32
    %c0_i32_1 = arith.constant 0 : i32
    return %c0_i32, %c0_i32_0 : i32, i32
  }
  func.func @transform_15(%arg0: i32) -> (i32, i32) {
    %c0_i32 = arith.constant 0 : i32
    %c0_i32_0 = arith.constant 0 : i32
    %c0_i32_1 = arith.constant 0 : i32
    return %c0_i32, %c0_i32_0 : i32, i32
  }
  func.func @transform_16(%arg0: i32) -> (i32, i32) {
    %c0_i32 = arith.constant 0 : i32
    %c0_i32_0 = arith.constant 0 : i32
    %c0_i32_1 = arith.constant 0 : i32
    return %c0_i32, %c0_i32_0 : i32, i32
  }
  func.func @transform_17(%arg0: i32) -> (i32, i32) {
    %c0_i32 = arith.constant 0 : i32
    %c0_i32_0 = arith.constant 0 : i32
    %c0_i32_1 = arith.constant 0 : i32
    return %c0_i32, %c0_i32_0 : i32, i32
  }
  func.func @transform_18(%arg0: i32) -> (i32, i32, i32) {
    %c0_i32 = arith.constant 0 : i32
    %c0_i32_0 = arith.constant 0 : i32
    %c0_i32_1 = arith.constant 0 : i32
    return %arg0, %c0_i32, %c0_i32_0 : i32, i32, i32
  }
  func.func @transform_19(%arg0: i32) -> (i32, i32, i32) {
    %c0_i32 = arith.constant 0 : i32
    %c0_i32_0 = arith.constant 0 : i32
    %c0_i32_1 = arith.constant 0 : i32
    return %arg0, %c0_i32, %c0_i32_0 : i32, i32, i32
  }
}

</mosaic_0001>

<bundles_post_ra>
// kernel: tpu_custom_call.1
= control target key start
LH: loop header
LB: loop body
LE: loop exit
PB: predicated region body
PF: predicated region fallthrough
CT: control target
= control target key end

     0   :  { %s4723_s0 = inlined_call_operand.hbm [shape: f32[16,32], index: 0, kind: input, shape index: {}]   ;;  %s4724_s1 = inlined_call_operand.vmem [shape: f32[8,1], index: 1, kind: input, shape index: {}]   ;;  %s4725_s2 = inlined_call_operand.hbm [shape: f32[8,8], index: 2, kind: input, shape index: {}]   ;;  %s4726_s3 = inlined_call_operand.vmem [shape: bf16[32,512], index: 3, kind: input, shape index: {}]   ;;  %s4727_s4 = inlined_call_operand.hbm [shape: f32[1,512], index: 4, kind: input, shape index: {}]   ;;  %s4728_s5 = inlined_call_operand.hbm [shape: bf16[512,128], index: 5, kind: input, shape index: {}]   ;;  %s4729_s6 = inlined_call_operand.vmem [shape: f32[1,128], index: 6, kind: input, shape index: {}]   ;;  %s4730_s7 = inlined_call_operand.hbm [shape: bf16[128,896], index: 7, kind: input, shape index: {}]   ;;  %s4731_s8 = inlined_call_operand.hbm [shape: f32[1,64], index: 8, kind: input, shape index: {}]   ;;  %s4732_s9 = inlined_call_operand.vmem [shape: bf16[64,32], index: 9, kind: input, shape index: {}]   ;;  %s4733_s10 = inlined_call_operand.hbm [shape: f32[1,32], index: 10, kind: input, shape index: {}]   ;;  %s4734_s11 = inlined_call_operand.hbm [shape: f32[1,160], index: 11, kind: input, shape index: {}]   ;;  %s4735_s12 = inlined_call_operand.<no memory space> [shape: f32[1,1], index: 12, kind: input, shape index: {}]   ;;  %s4736_s13 = inlined_call_operand.hbm [shape: f32[1,96], index: 13, kind: input, shape index: {}]   ;;  %s4737_s14 = inlined_call_operand.vmem [shape: bf16[96,96], index: 14, kind: input, shape index: {}]   ;;  %s4738_s15 = inlined_call_operand.vmem [shape: f32[1,96], index: 15, kind: input, shape index: {}]   ;;  %s4739_s16 = inlined_call_operand.vmem [shape: f32[1,96], index: 16, kind: input, shape index: {}]   ;;  %s4740_s18 = inlined_call_operand.hbm [shape: f32[2,1,8], index: 18, kind: output, shape index: {0}]   ;;  %s4741_s19 = inlined_call_operand.hbm [shape: f32[2,1,8], index: 19, kind: output, shape index: {1}]   ;;  %s4742_s17 = inlined_call_operand.<no memory space> [shape: f32[1,1], index: 17, kind: input, shape index: {}]  }
   0x1   :  { %4753 = sst [smem:[#allocation29_spill]] %s4723_s0  ;;  %v25_v0 = vstv %s4735_s12  ;;  %v27_v1 = vstv %s4742_s17 }
   0x2   :  { %4754 = sst [smem:[#allocation30_spill]] %s4724_s1  ;;  %26 = vst [vmem:[#allocation2] sm:$0x1] %v25_v0  ;;  %28 = vst [vmem:[#allocation3] sm:$0x1] %v27_v1 }
   0x3   :  { %4755 = sst [smem:[#allocation31_spill]] %s4725_s2 }
   0x4   :  { %4756 = sst [smem:[#allocation32_spill]] %s4726_s3 }
   0x5   :  { %4757 = sst [smem:[#allocation33_spill]] %s4727_s4 }
   0x6   :  { %4758 = sst [smem:[#allocation34_spill]] %s4728_s5 }
   0x7   :  { %4759 = sst [smem:[#allocation35_spill]] %s4730_s7 }
   0x8   :  { %4760 = sst [smem:[#allocation36_spill]] %s4738_s15 }
   0x9   :  { %4761 = sst [smem:[#allocation37_spill]] %s4739_s16 }
   0xa   :  { %4762 = sst [smem:[#allocation38_spill]] %s4740_s18 }
   0xb   :  { %4763 = sst [smem:[#allocation39_spill]] %s4741_s19 }
   0xc   :  { %29 = vsyncpa [#allocation5], 0 }
   0xd   :  { %31 = vsyncpa [#allocation5 + $0x1], 0 }
   0xe   :  { %32 = vsyncpa [#allocation8], 0 }
   0xf   :  { %33 = vsyncpa [#allocation11], 0 }
  0x10   :  { %34 = vsyncpa [#allocation14], 0 }
  0x11   :  { %35 = vsyncpa [#allocation17], 0 }
  0x12   :  { %36 = vsyncpa [#allocation6], 0 }
  0x13   :  { %38 = vsyncpa [#allocation6 + $0x1], 0 }
  0x14   :  { %39 = vsyncpa [#allocation21], 0 }
  0x15   :  { %41 = vsyncpa [#allocation21 + $0x1], 0  ;;  %s3977_s1 = smov 0   ;;  %s3979_s22 = smov 0  }
  0x16   :  { %s3981_s12 = smov 0   ;;  %s3983_s2 = smov 0  }
  0x17 LB: > { %s3850_s17 = smov [#allocation7]   ;;  %s3998_s24 = sadd.s32 4294967295, %s3848_s2   ;;  %s3848_s2 = sphi %s3983_s2, %s4800_s2   ;;  %s3844_s12 = sphi %s3981_s12, %s4799_s12   ;;  %s3840_s22 = sphi %s3979_s22, %s4798_s22   ;;  %s3836_s1 = sphi %s3977_s1, %s4797_s1  }
  0x18   : > { %s503_s23 = sshll.u32 %s3850_s17, 4  ;;  %p2878_p0 = scmp.ge.s32.totalorder %s3848_s2, 1  ;;  %s504_s23 = int_to_ptr.vmem [resolvable:$true] %s503_s23 }
  0x19   : > { %p4748_p1 = scmp.eq.s32.totalorder %s3998_s24, 0  ;;  %p487_p2 = scmp.lt.s32.totalorder %s3848_s2, 3 }
  0x1a   : > { %s3851_s3 = smov [#allocation10]   ;;  %s3852_s28 = smov [#allocation13]  }
  0x1b   : > { %p4003_p3 = pnand %p2878_p0, %p487_p2  ;;  %s527_s26 = sshll.u32 %s3851_s3, 4  ;;  %s4010_s26 = int_to_ptr.vmem [resolvable:$true] %s527_s26 }
  0x1c   : > { %s557_s29 = sshll.u32 %s3852_s28, 4  ;;  %s4766_s20 = sld [smem:[#allocation31_spill]]  ;;  %s4018_s29 = int_to_ptr.vmem [resolvable:$true] %s557_s29 }
  0x1d   : > { %s4764_s25 = scalar_select %p4003_p3, 1, 0 }
  0x1e   : > { %p3208_p5 = pneg %p4003_p3 }
  0x20   : > { %p4014_p6 = pnand %p3208_p5, %p4748_p1 }
  0x22   : > { %s3480_s21 = scalar_lea.hbm %s4766_s20, 128  ;;  %p4028_p8 = pneg %p4014_p6 }
  0x23   : > { %p3481_p7 = scmp.ne.s32.totalorder %s4766_s20, %s3480_s21  ;;  %p3487_p11 = scmp.lt.u32.totalorder %s3480_s21, %s4766_s20 }
  0x25   : > { %p3483_p9 = pnand %p4028_p8, %p3481_p7 }
  0x27   : > { %p3484_p10 = pneg %p3483_p9 }
  0x29   : > { %p3489_p12 = pnand %p3487_p11, %p3484_p10 }
  0x2b   : > { %3492 = shalt.err (!%p3489_p12)
}
  0x2c   : > { %s3493_s0 = scalar_lea.vmem %s504_s23, 128  ;;  %p3501_p5 = scmp.lt.s32.totalorder %s504_s23, %s504_s23 }
  0x2d   : > { %p3494_p13 = scmp.ne.s32.totalorder %s504_s23, %s3493_s0  ;;  %p3502_p4 = scmp.lt.s32.totalorder %s3493_s0, %s3493_s0 }
  0x2f   : > { %p3496_p0 = pnand %p3494_p13, %p4028_p8  ;;  %p3503_p1 = por %p3502_p4, %p3501_p5 }
  0x31   : > { %p3497_p2 = pneg %p3496_p0 }
  0x33   : > { %p3504_p3 = pnand %p3503_p1, %p3497_p2 }
  0x35   : > { %3507 = shalt.err (!%p3504_p3)
}
  0x36   : > { %3211 = dma.hbm_to_vmem [thread:$0]  (!%p4014_p6), %s4766_s20, 128, %s504_s23, [#allocation8]  }
  0x37   : > { %s4768_s5 = sld [smem:[#allocation34_spill]] }
  0x3d   : > { %s3508_s17 = scalar_lea.hbm %s4768_s5, 4096 }
  0x3e   : > { %p3509_p7 = scmp.ne.s32.totalorder %s4768_s5, %s3508_s17  ;;  %p3515_p1 = scmp.lt.u32.totalorder %s3508_s17, %s4768_s5 }
  0x40   : > { %p3511_p9 = pnand %p3509_p7, %p4028_p8 }
  0x42   : > { %p3512_p4 = pneg %p3511_p9 }
  0x44   : > { %p3517_p3 = pnand %p3515_p1, %p3512_p4 }
  0x46   : > { %3520 = shalt.err (!%p3517_p3)
}
  0x47   : > { %s3521_s23 = scalar_lea.vmem %s4010_s26, 4096  ;;  %p3529_p13 = scmp.lt.s32.totalorder %s4010_s26, %s4010_s26 }
  0x48   : > { %p3522_p10 = scmp.ne.s32.totalorder %s4010_s26, %s3521_s23  ;;  %p3530_p0 = scmp.lt.s32.totalorder %s3521_s23, %s3521_s23 }
  0x4a   : > { %p3524_p11 = pnand %p3522_p10, %p4028_p8  ;;  %p3531_p2 = por %p3530_p0, %p3529_p13 }
  0x4c   : > { %p3525_p12 = pneg %p3524_p11 }
  0x4e   : > { %p3532_p5 = pnand %p3531_p2, %p3525_p12 }
  0x50   : > { %3535 = shalt.err (!%p3532_p5)
}
  0x51   : > { %s3853_s16 = smov 64   ;;  %s3854_s15 = smov 4  }
  0x52   : > { %3217 = dma.hbm_to_vmem [thread:$0]  (!%p4014_p6), %s4768_s5, 4096, %s4010_s26, [#allocation11], %s3853_s16, %s3853_s16, %s3854_s15  }
  0x53   : > { %s3536_s17 = scalar_lea.hbm %s4731_s8, 16 }
  0x54   : > { %p3537_p7 = scmp.ne.s32.totalorder %s4731_s8, %s3536_s17  ;;  %p3543_p1 = scmp.lt.u32.totalorder %s3536_s17, %s4731_s8 }
  0x56   : > { %p3539_p9 = pnand %p3537_p7, %p4028_p8 }
  0x58   : > { %p3540_p4 = pneg %p3539_p9 }
  0x5a   : > { %p3545_p3 = pnand %p3543_p1, %p3540_p4 }
  0x5c   : > { %3548 = shalt.err (!%p3545_p3)
}
  0x5d   : > { %s3549_s26 = scalar_lea.vmem %s4018_s29, 16  ;;  %s3556_s16 = scalar_lea.vmem %s4018_s29, 32 }
  0x5e   : > { %p3550_p10 = scmp.ne.s32.totalorder %s4018_s29, %s3549_s26  ;;  %p3557_p13 = scmp.lt.s32.totalorder %s4018_s29, %s4018_s29 }
  0x5f   : > { %p3558_p0 = scmp.lt.s32.totalorder %s3556_s16, %s3549_s26 }
  0x60   : > { %p3552_p11 = pnand %p3550_p10, %p4028_p8 }
  0x61   : > { %p3559_p2 = por %p3558_p0, %p3557_p13 }
  0x62   : > { %p3553_p12 = pneg %p3552_p11 }
  0x64   : > { %p3560_p5 = pnand %p3559_p2, %p3553_p12 }
  0x66   : > { %3563 = shalt.err (!%p3560_p5)
}
  0x67   : > { %3223 = dma.hbm_to_vmem [thread:$0]  (!%p4014_p6), %s4731_s8, 16, %s4018_s29, [#allocation14]  }
  0x68   : > { %s3855_s18 = smov [#allocation16]   ;;  %s3856_s19 = smov [#allocation9]  }
  0x69   : > { %s582_s30 = sshll.u32 %s3855_s18, 4  ;;  %s517_s21 = sshll.u32 %s3856_s19, 4  ;;  %s583_s30 = int_to_ptr.vmem [resolvable:$true] %s582_s30  ;;  %s518_s21 = int_to_ptr.vmem [resolvable:$true] %s517_s21 }
  0x6a   : > { %s3564_s0 = scalar_lea.hbm %s4734_s11, 32 }
  0x6b   : > { %p3565_p7 = scmp.ne.s32.totalorder %s4734_s11, %s3564_s0  ;;  %p3571_p1 = scmp.lt.u32.totalorder %s3564_s0, %s4734_s11 }
  0x6d   : > { %p3567_p9 = pnand %p3565_p7, %p4028_p8 }
  0x6f   : > { %p3568_p4 = pneg %p3567_p9 }
  0x71   : > { %p3573_p3 = pnand %p3571_p1, %p3568_p4 }
  0x73   : > { %3576 = shalt.err (!%p3573_p3)
}
  0x74   : > { %s3577_s29 = scalar_lea.vmem %s583_s30, 32  ;;  %p3585_p13 = scmp.lt.s32.totalorder %s583_s30, %s583_s30 }
  0x75   : > { %p3578_p10 = scmp.ne.s32.totalorder %s583_s30, %s3577_s29  ;;  %p3586_p0 = scmp.lt.s32.totalorder %s3577_s29, %s3577_s29 }
  0x77   : > { %p3580_p11 = pnand %p3578_p10, %p4028_p8  ;;  %p3587_p2 = por %p3586_p0, %p3585_p13 }
  0x79   : > { %p3581_p12 = pneg %p3580_p11 }
  0x7b   : > { %p3588_p5 = pnand %p3587_p2, %p3581_p12 }
  0x7d   : > { %3591 = shalt.err (!%p3588_p5)
}
  0x7e   : > { %3229 = dma.hbm_to_vmem [thread:$0]  (!%p4014_p6), %s4734_s11, 32, %s583_s30, [#allocation17]  }
  0x7f   : > { %s4769_s4 = sld [smem:[#allocation33_spill]] }
  0x85   : > { %s3592_s28 = scalar_lea.hbm %s4769_s4, 64 }
  0x86   : > { %p3593_p7 = scmp.ne.s32.totalorder %s4769_s4, %s3592_s28  ;;  %p3599_p1 = scmp.lt.u32.totalorder %s3592_s28, %s4769_s4 }
  0x88   : > { %p3595_p9 = pnand %p3593_p7, %p4028_p8 }
  0x8a   : > { %p3596_p4 = pneg %p3595_p9 }
  0x8c   : > { %p3601_p3 = pnand %p3599_p1, %p3596_p4 }
  0x8e   : > { %3604 = shalt.err (!%p3601_p3)
}
  0x8f   : > { %s3605_s20 = scalar_lea.vmem %s518_s21, 64  ;;  %p3613_p13 = scmp.lt.s32.totalorder %s518_s21, %s518_s21 }
  0x90   : > { %p3606_p10 = scmp.ne.s32.totalorder %s518_s21, %s3605_s20  ;;  %p3614_p0 = scmp.lt.s32.totalorder %s3605_s20, %s3605_s20 }
  0x92   : > { %p3608_p11 = pnand %p3606_p10, %p4028_p8  ;;  %p3615_p2 = por %p3614_p0, %p3613_p13 }
  0x94   : > { %p3609_p12 = pneg %p3608_p11 }
  0x96   : > { %p3616_p5 = pnand %p3615_p2, %p3609_p12 }
  0x98   : > { %3619 = shalt.err (!%p3616_p5)
}
  0x99   : > { %3214 = dma.hbm_to_vmem [thread:$0]  (!%p4014_p6), %s4769_s4, 64, %s518_s21, [#allocation8]  }
  0x9a   : > { %s3857_s15 = smov [#allocation12]   ;;  %s4770_s7 = sld [smem:[#allocation35_spill]] }
  0x9b   : > { %s543_s18 = sshll.u32 %s3857_s15, 4  ;;  %s544_s18 = int_to_ptr.vmem [resolvable:$true] %s543_s18 }
  0xa0   : > { %s3620_s28 = scalar_lea.hbm %s4770_s7, 7168 }
  0xa1   : > { %p3621_p7 = scmp.ne.s32.totalorder %s4770_s7, %s3620_s28  ;;  %p3627_p1 = scmp.lt.u32.totalorder %s3620_s28, %s4770_s7 }
  0xa3   : > { %p3623_p9 = pnand %p3621_p7, %p4028_p8 }
  0xa5   : > { %p3624_p4 = pneg %p3623_p9 }
  0xa7   : > { %p3629_p3 = pnand %p3627_p1, %p3624_p4 }
  0xa9   : > { %3632 = shalt.err (!%p3629_p3)
}
  0xaa   : > { %s3633_s21 = scalar_lea.vmem %s544_s18, 7168  ;;  %p3641_p13 = scmp.lt.s32.totalorder %s544_s18, %s544_s18 }
  0xab   : > { %p3634_p10 = scmp.ne.s32.totalorder %s544_s18, %s3633_s21  ;;  %p3642_p0 = scmp.lt.s32.totalorder %s3633_s21, %s3633_s21 }
  0xad   : > { %p3636_p11 = pnand %p3634_p10, %p4028_p8  ;;  %p3643_p2 = por %p3642_p0, %p3641_p13 }
  0xaf   : > { %p3637_p12 = pneg %p3636_p11 }
  0xb1   : > { %p3644_p5 = pnand %p3643_p2, %p3637_p12 }
  0xb3   : > { %3647 = shalt.err (!%p3644_p5)
}
  0xb4   : > { %s3858_s20 = smov 448   ;;  %s3859_s30 = smov 28  }
  0xb5   : > { %3220 = dma.hbm_to_vmem [thread:$0]  (!%p4014_p6), %s4770_s7, 7168, %s544_s18, [#allocation11], %s3858_s20, %s3858_s20, %s3859_s30  }
  0xb6   : > { %s3860_s19 = smov [#allocation15]   ;;  %s3861_s28 = smov [#allocation18]  }
  0xb7   : > { %s571_s17 = sshll.u32 %s3860_s19, 4  ;;  %s596_s0 = sshll.u32 %s3861_s28, 4  ;;  %s572_s17 = int_to_ptr.vmem [resolvable:$true] %s571_s17  ;;  %s4145_s0 = int_to_ptr.vmem [resolvable:$true] %s596_s0 }
  0xb8   : > { %s3648_s16 = scalar_lea.hbm %s4733_s10, 16 }
  0xb9   : > { %p3649_p7 = scmp.ne.s32.totalorder %s4733_s10, %s3648_s16  ;;  %p3655_p1 = scmp.lt.u32.totalorder %s3648_s16, %s4733_s10 }
  0xbb   : > { %p3651_p9 = pnand %p3649_p7, %p4028_p8 }
  0xbd   : > { %p3652_p4 = pneg %p3651_p9 }
  0xbf   : > { %p3657_p3 = pnand %p3655_p1, %p3652_p4 }
  0xc1   : > { %3660 = shalt.err (!%p3657_p3)
}
  0xc2   : > { %s3661_s20 = scalar_lea.vmem %s572_s17, 16  ;;  %s3668_s30 = scalar_lea.vmem %s572_s17, 32 }
  0xc3   : > { %p3662_p10 = scmp.ne.s32.totalorder %s572_s17, %s3661_s20  ;;  %p3669_p13 = scmp.lt.s32.totalorder %s572_s17, %s572_s17 }
  0xc4   : > { %p3670_p0 = scmp.lt.s32.totalorder %s3668_s30, %s3661_s20 }
  0xc5   : > { %p3664_p11 = pnand %p3662_p10, %p4028_p8 }
  0xc6   : > { %p3671_p2 = por %p3670_p0, %p3669_p13 }
  0xc7   : > { %p3665_p12 = pneg %p3664_p11 }
  0xc9   : > { %p3672_p5 = pnand %p3671_p2, %p3665_p12 }
  0xcb   : > { %3675 = shalt.err (!%p3672_p5)
}
  0xcc   : > { %3226 = dma.hbm_to_vmem [thread:$0]  (!%p4014_p6), %s4733_s10, 16, %s572_s17, [#allocation14]  }
  0xcd   : > { %s3676_s23 = scalar_lea.hbm %s4736_s13, 16 }
  0xce   : > { %p3677_p7 = scmp.ne.s32.totalorder %s4736_s13, %s3676_s23  ;;  %p3683_p1 = scmp.lt.u32.totalorder %s3676_s23, %s4736_s13 }
  0xd0   : > { %p3679_p9 = pnand %p3677_p7, %p4028_p8 }
  0xd2   : > { %p3680_p4 = pneg %p3679_p9 }
  0xd4   : > { %p3685_p3 = pnand %p3683_p1, %p3680_p4 }
  0xd6   : > { %3688 = shalt.err (!%p3685_p3)
}
  0xd7   : > { %s3689_s17 = scalar_lea.vmem %s4145_s0, 16  ;;  %s3696_s18 = scalar_lea.vmem %s4145_s0, 32 }
  0xd8   : > { %p3690_p10 = scmp.ne.s32.totalorder %s4145_s0, %s3689_s17  ;;  %p3697_p13 = scmp.lt.s32.totalorder %s4145_s0, %s4145_s0 }
  0xd9   : > { %p3698_p0 = scmp.lt.s32.totalorder %s3696_s18, %s3689_s17 }
  0xda   : > { %p3692_p11 = pnand %p3690_p10, %p4028_p8 }
  0xdb   : > { %p3699_p2 = por %p3698_p0, %p3697_p13 }
  0xdc   : > { %p3693_p12 = pneg %p3692_p11 }
  0xde   : > { %p3700_p5 = pnand %p3699_p2, %p3693_p12 }
  0xe0   : > { %3703 = shalt.err (!%p3700_p5)
}
  0xe1   : > { %3232 = dma.hbm_to_vmem [thread:$0]  (!%p4014_p6), %s4736_s13, 16, %s4145_s0, [#allocation17]  }
  0xe2   : > { %s2877_s27 = sadd.s32 4294967294, %s3848_s2   ;;  %s4191_s3 = sadd.s32 1, %s3848_s2  }
  0xe3   : > { %s51_s4 = ssub.s32 %s3848_s2, %s4191_s3  ;;  %s54_s15 = sadd.s32 1, %s3844_s12 }
  0xe4   : > { %p52_p8 = scmp.eq.s32.totalorder %s51_s4, 0  ;;  %p61_p7 = scmp.ne.s32.totalorder %s3844_s12, %s3840_s22 }
  0xe5   : > { %p62_p9 = scmp.eq.s32.totalorder %s3848_s2, 0  ;;  %p67_p4 = scmp.ne.s32.totalorder %s3840_s22, %s3836_s1 }
  0xe6   : > { %s4202_s19 = scalar_select %p52_p8, %s3844_s12, %s54_s15  }
  0xe7   : > { %p4204_p1 = por %p62_p9, %p61_p7  ;;  %p4772_p3 = scmp.eq.s32.totalorder %s3998_s24, 0 }
  0xe8   : > { %p448_p10 = scmp.eq.s32.totalorder %s3998_s24, 1  ;;  %p454_p11 = scmp.eq.s32.totalorder %s2877_s27, 1 }
  0xe9   : > { %p4210_p6 = por %p4772_p3, %p67_p4  ;;  %p3252_p12 = scmp.lt.s32.totalorder %s3848_s2, 2 }
  0xea   : > { %s619_s23 = sand.u32 1, %s3844_s12   ;;  %p4217_p13 = por %p448_p10, %p61_p7 }
  0xeb   : > { %p4221_p0 = por %p454_p11, %p67_p4  ;;  %s2888_s21 = sshll.u32 %s619_s23, 3 }
  0xec   : > { %s4774_s26 = scalar_select %p4217_p13, 1, 0 }
  0xed   : > { %s4775_s16 = scalar_select %p4221_p0, 1, 0 }
  0xee   : > { %s2889_s29 = sshll.u32 %s3848_s2, 7  ;;  %s4776_s20 = sld [smem:[#allocation29_spill]] }
  0xef   : > { %s623_s27 = scalar_lea.vmem [#allocation4], %s2888_s21  ;;  %p4235_p2 = pnand %p3252_p12, %p4204_p1 }
  0xf0   : > { %s630_s4 = sshll.u32 %s623_s27, 4  ;;  %s620_s5 = scalar_lea.sflag [#allocation5], %s619_s23  ;;  %s4231_s4 = int_to_ptr.vmem [resolvable:$true] %s630_s4 }
  0xf1   : > { %p3706_p8 = pneg %p4235_p2 }
  0xf4   : > { %s4229_s30 = scalar_lea.hbm %s4776_s20, %s2889_s29  ;;  %s3709_s17 = scalar_lea.hbm %s4776_s20, 256 }
  0xf5   : > { %s3704_s7 = scalar_lea.hbm %s4229_s30, 128  ;;  %p3710_p4 = scmp.lt.u32.totalorder %s4229_s30, %s4776_s20 }
  0xf6   : > { %p3705_p5 = scmp.ne.s32.totalorder %s4229_s30, %s3704_s7  ;;  %p3711_p1 = scmp.lt.u32.totalorder %s3709_s17, %s3704_s7 }
  0xf7   : > { %p3713_p10 = scmp.lt.u32.totalorder %s3704_s7, %s4229_s30 }
  0xf8   : > { %p3707_p7 = pnand %p3706_p8, %p3705_p5  ;;  %p3712_p3 = por %p3711_p1, %p3710_p4 }
  0xfa   : > { %p3708_p9 = pneg %p3707_p7  ;;  %p3714_p11 = por %p3713_p10, %p3712_p3 }
  0xfc   : > { %p3715_p12 = pnand %p3714_p11, %p3708_p9 }
  0xfe   : > { %3718 = shalt.err (!%p3715_p12)
}
  0xff   : > { %s3719_s23 = scalar_lea.vmem %s4231_s4, 128  ;;  %s3862_s27 = smov [#allocation4]  }
 0x100   : > { %p3720_p5 = scmp.ne.s32.totalorder %s4231_s4, %s3719_s23  ;;  %s3724_s21 = sshll.u32 %s3862_s27, 4  ;;  %s3725_s21 = int_to_ptr.vmem [resolvable:$false] %s3724_s21 }
 0x101   : > { %s3726_s29 = scalar_lea.vmem %s3725_s21, 256  ;;  %p3727_p13 = scmp.lt.s32.totalorder %s4231_s4, %s3725_s21 }
 0x102   : > { %p3722_p7 = pnand %p3720_p5, %p3706_p8  ;;  %p3728_p4 = scmp.lt.s32.totalorder %s3726_s29, %s3719_s23 }
 0x104   : > { %p3723_p0 = pneg %p3722_p7  ;;  %p3729_p1 = por %p3728_p4, %p3727_p13 }
 0x106   : > { %p3730_p3 = pnand %p3729_p1, %p3723_p0 }
 0x108   : > { %3733 = shalt.err (!%p3730_p3)
}
 0x109   : > { %3236 = dma.hbm_to_vmem [thread:$0]  (!%p4235_p2), %s4229_s30, 128, %s4231_s4, %s620_s5  }
 0x10a   : > { %p4778_p9 = scmp.ne.s32.totalorder %s4764_s25, 0 }
 0x10b   : > { %s4267_s7 = sand.u32 (!%p4778_p9), 1, %s3840_s22  }
 0x10c   : > { %639 = sbr.rel (%p4778_p9) target bundleno = 3120 (0xc30), region = 92  ;;  %s2891_s17 = sshll.u32 (!%p4778_p9), %s4267_s7, 3 }
 0x10d   : > { %s642_s28 = scalar_lea.sflag (!%p4778_p9), [#allocation5], %s4267_s7  ;;  %s4271_s18 = scalar_lea.vmem (!%p4778_p9), [#allocation4], %s2891_s17 }
 0x113   : > { %3807 = dma.done.wait (%p4210_p6), %s642_s28, 128  }
 0x114   : > { %3809 = vsyncadd (%p4210_p6), %s642_s28, 4294967168  ;;  %p4779_p13 = scmp.eq.s32.totalorder %s3998_s24, 0 }
 0x116   : > { %3811 = dma.done.wait (%p4779_p13), [#allocation8], 192   ;;  %p4780_p0 = pmov %p4779_p13 }
 0x118   : > { %3813 = vsyncadd (%p4780_p0), [#allocation8], 4294967104  ;;  %p4781_p2 = pmov %p4780_p0 }
 0x119   : > { %p4782_p8 = pmov %p4780_p0 }
 0x11a   : > { %3815 = dma.done.wait (%p4781_p2), [#allocation11], 11264  }
 0x11b   : > { %3817 = vsyncadd (%p4782_p8), [#allocation11], 4294956032  ;;  %p4783_p10 = pmov %p4780_p0 }
 0x11c   : > { %p4784_p11 = pmov %p4780_p0 }
 0x11d   : > { %3819 = dma.done.wait (%p4783_p10), [#allocation14], 32  }
 0x11e   : > { %3821 = vsyncadd (%p4784_p11), [#allocation14], 4294967264  ;;  %p4785_p6 = pmov %p4780_p0 }
 0x11f   : > { %p4786_p12 = pmov %p4780_p0 }
 0x120   : > { %3823 = dma.done.wait (%p4785_p6), [#allocation17], 48  }
 0x121   : > { %3825 = vsyncadd (%p4786_p12), [#allocation17], 4294967248  ;;  %v3863_v2 = vmov 0   ;;  %s4787_s0 = sld [smem:[#allocation32_spill]]  ;;  %v4309_v7 = vld [vmem:[%s4271_s18] sm:$0xff]  ;;  %vm809_vm0 = vcmask 261120   ;;  %v749_v47 = vlaneseq }
 0x122   : > { %845 = vmatprep.mubr.bf16.mxu1 %v3863_v2  ;;  %3312 = vset.pattern.permute.xlu0 %v3863_v2  ;;  %v738_v10 = vpack.c.bf16 %v4309_v7, %v4309_v7  ;;  %v3351_v12 = vld [vmem:[#allocation10 + $0x40] sm:$0xff]   ;;  %v3353_v14 = vld [vmem:[#allocation10 + $0x48] sm:$0xff]   ;;  %v3355_v16 = vld [vmem:[#allocation10 + $0x50] sm:$0xff]   ;;  %s4788_s21 = sld [smem:[#allocation30_spill]]  ;;  %vm3865_vm4 = vmmov 0   ;;  %vm1812_vm6 = vcmask 523264  }
 0x123   : > { %3318 = vset.pattern.permute.xlu1 %v3863_v2  ;;  %v3352_v13 = vld [vmem:[#allocation10] sm:$0xff]   ;;  %3027 = vmatprep.subr.bf16.mxu0 %v3351_v12  ;;  %v3354_v15 = vld [vmem:[#allocation10 + $0x8] sm:$0xff]   ;;  %v3357_v19 = vld [vmem:[#allocation10 + $0x10] sm:$0xff]   ;;  %v4328_v48 = vshrl.u32 %v749_v47, 7  ;;  %v3864_v47 = vmov 0.0   ;;  %s3867_s29 = smov 64  }
 0x124   : > { %3028 = vmatpush3.bf16.msra.mxu0 %v3352_v13  ;;  %v3356_v18 = vld [vmem:[#allocation10 + $0xc0] sm:$0xff]   ;;  %v3359_v20 = vld [vmem:[#allocation10 + $0x58] sm:$0xff]   ;;  %v3360_v22 = vld [vmem:[#allocation10 + $0xc8] sm:$0xff]   ;;  %s3868_s17 = smov 96   ;;  %vm1907_vm7 = vcmask 785408   ;;  %vm2125_vm9 = vcmask 64512  }
 0x125   : > { %3029 = vmatprep.subr.bf16.mxu0 %v3353_v14  ;;  %v3358_v21 = vld [vmem:[#allocation10 + $0x80] sm:$0xff]   ;;  %v3361_v23 = vld [vmem:[#allocation10 + $0x18] sm:$0xff]   ;;  %v3362_v25 = vld [vmem:[#allocation10 + $0x88] sm:$0xff]   ;;  %v4331_v49 = vsub.s32 0, %v4328_v48  ;;  %v755_v51 = vsub.s32 1, %v4328_v48  ;;  %v759_v57 = vsub.s32 2, %v4328_v48 }
 0x126   : > { %v3363_v24 = vld [vmem:[#allocation10 + $0x60] sm:$0xff]   ;;  %v3364_v26 = vld [vmem:[#allocation10 + $0xd0] sm:$0xff]   ;;  %v3367_v28 = vld [vmem:[#allocation10 + $0x68] sm:$0xff]   ;;  %v763_v60 = vsub.s32 3, %v4328_v48  ;;  %vm2161_vm13 = vcmask 1043456   ;;  %s4789_s4 = sld [smem:[#allocation36_spill]] }
 0x127   : > { %v3339_v3 = vld [vmem:[%s4787_s0 + $0x4] ss:$16 sps:$4 sm:$0xff]   ;;  %v3341_v4 = vld [vmem:[%s4787_s0] ss:$16 sps:$4 sm:$0xff]   ;;  %v3347_v8 = vld [vmem:[%s4787_s0 + $0xc] ss:$16 sps:$4 sm:$0xff]  }
 0x128   : > { %813 = vmatprep.subr.bf16.mxu1 %v3339_v3  ;;  %v3342_v5 = vld [vmem:[%s4787_s0 + $0x24] ss:$16 sps:$4 sm:$0xff]   ;;  %v3344_v6 = vld [vmem:[%s4787_s0 + $0x20] ss:$16 sps:$4 sm:$0xff]   ;;  %v3345_v9 = vld [vmem:[%s4787_s0 + $0x8] ss:$16 sps:$4 sm:$0xff]   ;;  %3030 = vmatpush3.bf16.msra.mxu0 %v3354_v15 }
 0x129   : > { %814 = vmatpush1.bf16.msra.mxu1 %v3341_v4  ;;  %v3350_v11 = vld [vmem:[%s4787_s0 + $0x2c] ss:$16 sps:$4 sm:$0xff]   ;;  %v3348_v17 = vld [vmem:[%s4787_s0 + $0x28] ss:$16 sps:$4 sm:$0xff]   ;;  %3031 = vmatprep.subr.bf16.mxu0 %v3355_v16  ;;  %s4790_s15 = sld [smem:[#allocation37_spill]]  ;;  %s4752_s23 = sshll.u32 %s3998_s24, 4 }
 0x12a   : > { %815 = vmatprep.subr.bf16.mxu1 %v3342_v5  ;;  %v3365_v27 = vld [vmem:[#allocation10 + $0x20] sm:$0xff]   ;;  %v3366_v29 = vld [vmem:[#allocation10 + $0x90] sm:$0xff]   ;;  %v3368_v30 = vld [vmem:[#allocation10 + $0xd8] sm:$0xff]   ;;  %s4791_s28 = sld [smem:[#allocation39_spill]]  ;;  %s2682_s30 = scalar_lea.sflag [#allocation21], %s4267_s7 }
 0x12b   : > { %v3369_v31 = vld [vmem:[#allocation10 + $0x28] sm:$0xff]   ;;  %v3370_v32 = vld [vmem:[#allocation10 + $0x98] sm:$0xff]   ;;  %v3371_v33 = vld [vmem:[#allocation10 + $0x70] sm:$0xff]   ;;  %p4792_p7 = scmp.ne.s32.totalorder %s4774_s26, 0 }
 0x12c   : > { %3032 = vmatpush3.bf16.msra.mxu0 %v3357_v19  ;;  %v3372_v34 = vld [vmem:[#allocation10 + $0xe0] sm:$0xff]   ;;  %v3373_v35 = vld [vmem:[#allocation10 + $0x30] sm:$0xff]   ;;  %v3375_v37 = vld [vmem:[#allocation10 + $0x78] sm:$0xff]  }
 0x12d   : > { %816 = vmatpush1.bf16.msra.mxu1 %v3344_v6  ;;  %3033 = vmatprep.subr.bf16.mxu0 %v3359_v20  ;;  %v3374_v36 = vld [vmem:[#allocation10 + $0xa0] sm:$0xff]   ;;  %v3376_v38 = vld [vmem:[#allocation10 + $0xe8] sm:$0xff]   ;;  %v3377_v39 = vld [vmem:[#allocation10 + $0x38] sm:$0xff]  }
 0x12e   : > { %854 = vmatprep.subr.bf16.mxu1 %v3347_v8  ;;  %v3378_v40 = vld [vmem:[#allocation10 + $0xa8] sm:$0xff]   ;;  %v3379_v41 = vld [vmem:[#allocation10 + $0xf0] sm:$0xff]   ;;  %v3381_v43 = vld [vmem:[#allocation10 + $0xf8] sm:$0xff]  }
 0x12f   : > { %v3380_v42 = vld [vmem:[#allocation10 + $0xb0] sm:$0xff]   ;;  %v3382_v44 = vld [vmem:[#allocation10 + $0xb8] sm:$0xff]   ;;  %v3385_v45 = vld [vmem:[#allocation12 + $0x4] ss:$28 sps:$4 sm:$0xff]  }
 0x130   : > { %2908 = vmatmul.mubr.msk.bf16.vlgmr.msra.gmra.mrb[0].mxu1 %vm809_vm0, %v738_v10  ;;  %3034 = vmatpush3.bf16.msra.mxu0 %v3361_v23  ;;  %v3388_v46 = vld [vmem:[#allocation12 + $0xc] ss:$28 sps:$4 sm:$0xff]   ;;  %v747_v50 = vld [vmem:[#allocation9] sm:$0xf]  ;;  %v3389_v13 = vld [vmem:[#allocation12 + $0x38] ss:$28 sps:$4 sm:$0xff]   ;;  %s4649_s5 = scalar_lea.hbm %s4791_s28, %s4752_s23 }
 0x131   : > { %855 = vmatpush1.bf16.msra.mxu1 %v3345_v9  ;;  %886 = vmatprep.mubr.bf16.mxu1 %v3863_v2  ;;  %v752_v52 = vrot.slane %v747_v50, %v4331_v49  ;;  %v756_v53 = vrot.slane %v747_v50, %v755_v51  ;;  %v760_v0 = vrot.slane %v747_v50, %v759_v57  ;;  %v3383_v4 = vld [vmem:[#allocation12] ss:$28 sps:$4 sm:$0xff]   ;;  %v3397_v16 = vld [vmem:[#allocation12 + $0x74] ss:$28 sps:$4 sm:$0xff]   ;;  %v3386_v19 = vld [vmem:[#allocation12 + $0x8] ss:$28 sps:$4 sm:$0xff]  }
 0x132   : > { %856 = vmatprep.subr.bf16.mxu1 %v3350_v11  ;;  %3035 = vmatprep.subr.bf16.mxu0 %v3363_v24  ;;  %v764_v3 = vrot.slane %v747_v50, %v763_v60  ;;  %v3391_v6 = vld [vmem:[#allocation12 + $0x3c] ss:$28 sps:$4 sm:$0xff]   ;;  %v3395_v20 = vld [vmem:[#allocation12 + $0x70] ss:$28 sps:$4 sm:$0xff]   ;;  %v4345_v50 = vld [vmem:[%s4788_s21] sm:$0xff]  ;;  %s3866_s21 = smov 32  }
 0x133   : > { %v3403_v23 = vld [vmem:[#allocation12 + $0xac] ss:$28 sps:$4 sm:$0xff]   ;;  %v3392_v24 = vld [vmem:[#allocation12 + $0x40] ss:$28 sps:$4 sm:$0xff]   ;;  %vm1867_vm1 = vcmp.ge.f32.partialorder %v4345_v50, 3.0  ;;  %vm1876_vm2 = vcmp.ge.f32.partialorder %v4345_v50, 2.0 }
 0x134   : > { %3036 = vmatpush3.bf16.msra.mxu0 %v3365_v27  ;;  %v3398_v27 = vld [vmem:[#allocation12 + $0x78] ss:$28 sps:$4 sm:$0xff]   ;;  %vm1885_vm3 = vcmp.ge.f32.partialorder %v4345_v50, 1.0  ;;  %v3464_v48 = vld [vmem:[%s4732_s9 + $0x8] sm:$0xff]   ;;  %vm1858_vm5 = vcmp.ge.f32.partialorder %v4345_v50, 4.0  ;;  %vm2024_vm10 = vcmp.le.f32.partialorder %v4345_v50, 5.0 }
 0x135   : > { %857 = vmatpush1.bf16.msra.mxu1 %v3348_v17  ;;  %3037 = vmatprep.subr.bf16.mxu0 %v3367_v28  ;;  %v3406_v28 = vld [vmem:[#allocation12 + $0xb4] ss:$28 sps:$4 sm:$0xff]   ;;  %vm2290_vm11 = vcmp.ge.f32.partialorder %v4345_v50, 6.0  ;;  %vm2298_vm12 = vcmp.le.f32.partialorder %v4345_v50, 1.0  ;;  %vm2014_vm14 = vcmp.le.f32.partialorder %v4345_v50, 6.0  ;;  %vm2235_vm15 = vcmp.le.f32.partialorder %v4345_v50, 4.0 }
 0x136   : > { %3049 = vmatprep.subr.bf16.mxu1 %v3356_v18 }
 0x138   : > { %2909 = vmatmul.mubr.msk.bf16.vlgmr.msra.gmra.mrb[4].mxu1 %vm809_vm0, %v738_v10  ;;  %3038 = vmatpush3.bf16.msra.mxu0 %v3369_v31  ;;  %v3412_v31 = vld [vmem:[#allocation12 + $0xec] ss:$28 sps:$4 sm:$0xff]  }
 0x139   : > { %3050 = vmatpush3.bf16.msra.mxu1 %v3358_v21  ;;  %3039 = vmatprep.subr.bf16.mxu0 %v3371_v33  ;;  %v3410_v33 = vld [vmem:[#allocation12 + $0xe8] ss:$28 sps:$4 sm:$0xff]  }
 0x13a   : > { %3051 = vmatprep.subr.bf16.mxu1 %v3360_v22  ;;  %v3394_v22 = vld [vmem:[#allocation12 + $0x44] ss:$28 sps:$4 sm:$0xff]  }
 0x13c   : > { %3040 = vmatpush3.bf16.msra.mxu0 %v3373_v35  ;;  %v3418_v35 = vld [vmem:[#allocation12 + $0x124] ss:$28 sps:$4 sm:$0xff]  }
 0x13d   : > { %3052 = vmatpush3.bf16.msra.mxu1 %v3362_v25  ;;  %3041 = vmatprep.subr.bf16.mxu0 %v3375_v37  ;;  %v3401_v25 = vld [vmem:[#allocation12 + $0xa8] ss:$28 sps:$4 sm:$0xff]   ;;  %v3416_v37 = vld [vmem:[#allocation12 + $0x120] ss:$28 sps:$4 sm:$0xff]  }
 0x13e   : > { %3053 = vmatprep.subr.bf16.mxu1 %v3364_v26  ;;  %v3400_v26 = vld [vmem:[#allocation12 + $0x7c] ss:$28 sps:$4 sm:$0xff]  }
 0x140   : > { %3042 = vmatpush3.bf16.msra.mxu0 %v3377_v39  ;;  %v3424_v39 = vld [vmem:[#allocation12 + $0x15c] ss:$28 sps:$4 sm:$0xff]  }
 0x141   : > { %3054 = vmatpush3.bf16.msra.mxu1 %v3366_v29  ;;  %1600 = vmatprep.subr.bf16.mxu0 %v3385_v45  ;;  %v3404_v29 = vld [vmem:[#allocation12 + $0xb0] ss:$28 sps:$4 sm:$0xff]  }
 0x142   : > { %3055 = vmatprep.subr.bf16.mxu1 %v3368_v30  ;;  %v3409_v30 = vld [vmem:[#allocation12 + $0xe4] ss:$28 sps:$4 sm:$0xff]   ;;  %v3428_v45 = vld [vmem:[#allocation12 + $0x190] ss:$28 sps:$4 sm:$0xff]  }
 0x145   : > { %3056 = vmatpush3.bf16.msra.mxu1 %v3370_v32  ;;  %v3407_v32 = vld [vmem:[#allocation12 + $0xe0] ss:$28 sps:$4 sm:$0xff]  }
 0x146   : > { %3057 = vmatprep.subr.bf16.mxu1 %v3372_v34  ;;  %v3415_v34 = vld [vmem:[#allocation12 + $0x11c] ss:$28 sps:$4 sm:$0xff]  }
 0x149   : > { %3058 = vmatpush3.bf16.msra.mxu1 %v3374_v36  ;;  %v3413_v36 = vld [vmem:[#allocation12 + $0x118] ss:$28 sps:$4 sm:$0xff]  }
 0x14a   : > { %3059 = vmatprep.subr.bf16.mxu1 %v3376_v38  ;;  %v3421_v38 = vld [vmem:[#allocation12 + $0x154] ss:$28 sps:$4 sm:$0xff]  }
 0x14d   : > { %3060 = vmatpush3.bf16.msra.mxu1 %v3378_v40  ;;  %v3419_v40 = vld [vmem:[#allocation12 + $0x150] ss:$28 sps:$4 sm:$0xff]  }
 0x14e   : > { %3061 = vmatprep.subr.bf16.mxu1 %v3379_v41  ;;  %v3422_v41 = vld [vmem:[#allocation12 + $0x158] ss:$28 sps:$4 sm:$0xff]  }
 0x151   : > { %3062 = vmatpush3.bf16.msra.mxu1 %v3380_v42  ;;  %v3427_v42 = vld [vmem:[#allocation12 + $0x18c] ss:$28 sps:$4 sm:$0xff]  }
 0x152   : > { %3063 = vmatprep.subr.bf16.mxu1 %v3381_v43  ;;  %v3430_v43 = vld [vmem:[#allocation12 + $0x194] ss:$28 sps:$4 sm:$0xff]  }
 0x155   : > { %3064 = vmatpush3.bf16.msra.mxu1 %v3382_v44  ;;  %v3425_v44 = vld [vmem:[#allocation12 + $0x188] ss:$28 sps:$4 sm:$0xff]  }
 0x156   : > { %1641 = vmatprep.subr.bf16.mxu1 %v3388_v46  ;;  %v3433_v46 = vld [vmem:[#allocation12 + $0x14] ss:$28 sps:$4 sm:$0xff]  }
 0x203   : > { %v847_v54 = vpop.f32.mrb[0].mxu1 }
 0x204   : > { %v848_v55 = vadd.f32 %v847_v54, %v752_v52  ;;  %v849_v56 = vpop.f32.mrb[1].mxu1  ;;  %v1868_v52 = vsel %vm1867_vm1, 1.0, %v3864_v47  ;;  %vm2252_vm1 = vcmp.le.f32.partialorder %v4345_v50, 3.0 }
 0x205   : > { %v850_v58 = vadd.f32 %v849_v56, %v756_v53  ;;  %v851_v59 = vpop.f32.mrb[2].mxu1  ;;  %v1877_v53 = vsel %vm1876_vm2, 1.0, %v3864_v47  ;;  %vm2267_vm2 = vcmp.ge.f32.partialorder %v4345_v50, 5.0 }
 0x206   : > { %v895_v61 = vmax.f32 %v848_v55, 0.0  ;;  %v852_v62 = vpop.f32.mrb[3].mxu1  ;;  %v3313_v54 = vpack.i.bf16 %v1877_v53, %v1868_v52  ;;  %v1886_v55 = vsel %vm1885_vm3, 1.0, %v3864_v47  ;;  %vm2275_vm3 = vcmp.le.f32.partialorder %v4345_v50, 2.0 }
 0x207   : > { %v896_v63 = vmax.f32 %v850_v58, 0.0 }
 0x208   : > { %v899_v5 = vpack.c.bf16 %v895_v61, %v895_v61  ;;  %3314 = vperm.xlu0 %3312, %v3313_v54   ;;  %v2910_v61 = vld [vmem:[%s4729_s6] ss:$0 sm:$0xff] }
 0x209   : > { %v900_v1 = vpack.c.bf16 %v896_v63, %v896_v63 }
 0x20b   : > { %v888_v8 = vpop.f32.mrb[4].mxu1  ;;  %1198 = vmatprep.mubr.bf16.mxu0 %v900_v1 }
 0x20c   : > { %v889_v9 = vadd.f32 %v888_v8, %v760_v0  ;;  %v890_v10 = vpop.f32.mrb[5].mxu1  ;;  %1199 = vmatmul.mubr.bf16.vlgmr.msra.gmra.mrb[0].mxu0 %v899_v5  ;;  %1889 = vperm.xlu0 %3312, %v1886_v55   ;;  %v3431_v8 = vld [vmem:[#allocation12 + $0x10] ss:$28 sps:$4 sm:$0xff]  }
 0x20d   : > { %v891_v11 = vadd.f32 %v890_v10, %v764_v3  ;;  %v892_v12 = vpop.f32.mrb[6].mxu1  ;;  %1601 = vmatpush1.bf16.msra.mxu0 %v3383_v4  ;;  %1632 = vmatprep.mubr.bf16.mxu0 %v3863_v2 }
 0x20e   : > { %v897_v14 = vmax.f32 %v889_v9, 0.0  ;;  %v893_v15 = vpop.f32.mrb[7].mxu1  ;;  %1602 = vmatprep.subr.bf16.mxu0 %v3391_v6  ;;  %v3434_v9 = vld [vmem:[#allocation12 + $0x18] ss:$28 sps:$4 sm:$0xff]   ;;  %v3435_v12 = vld [vmem:[#allocation12 + $0x48] ss:$28 sps:$4 sm:$0xff]  }
 0x20f   : > { %v898_v17 = vmax.f32 %v891_v11, 0.0  ;;  %v3437_v11 = vld [vmem:[#allocation12 + $0x4c] ss:$28 sps:$4 sm:$0xff]   ;;  %v3439_v15 = vld [vmem:[#allocation12 + $0x80] ss:$28 sps:$4 sm:$0xff]  }
 0x210   : > { %v901_v21 = vpack.c.bf16 %v897_v14, %v897_v14  ;;  %v3441_v14 = vld [vmem:[#allocation12 + $0x84] ss:$28 sps:$4 sm:$0xff]  }
 0x211   : > { %v902_v18 = vpack.c.bf16 %v898_v17, %v898_v17  ;;  %1603 = vmatpush1.bf16.msra.mxu0 %v3389_v13  ;;  %v3438_v13 = vld [vmem:[#allocation12 + $0x50] ss:$28 sps:$4 sm:$0xff]   ;;  %v3445_v17 = vld [vmem:[#allocation12 + $0xbc] ss:$28 sps:$4 sm:$0xff]  }
 0x212   : > { %1604 = vmatprep.subr.bf16.mxu0 %v3397_v16  ;;  %v3442_v16 = vld [vmem:[#allocation12 + $0x88] ss:$28 sps:$4 sm:$0xff]  }
 0x213   : > { %1238 = vmatprep.mubr.bf16.mxu1 %v902_v18  ;;  %v3443_v18 = vld [vmem:[#allocation12 + $0xb8] ss:$28 sps:$4 sm:$0xff]  }
 0x214   : > { %1239 = vmatmul.mubr.bf16.vlgmr.msra.gmra.mrb[8].mxu1 %v901_v21  ;;  %v3450_v21 = vld [vmem:[#allocation12 + $0xf8] ss:$28 sps:$4 sm:$0xff]  }
 0x215   : > { %1642 = vmatpush1.bf16.msra.mxu1 %v3386_v19  ;;  %1605 = vmatpush1.bf16.msra.mxu0 %v3395_v20  ;;  %v3446_v19 = vld [vmem:[#allocation12 + $0xc0] ss:$28 sps:$4 sm:$0xff]   ;;  %v3447_v20 = vld [vmem:[#allocation12 + $0xf0] ss:$28 sps:$4 sm:$0xff]  }
 0x216   : > { %1643 = vmatprep.subr.bf16.mxu1 %v3394_v22  ;;  %1606 = vmatprep.subr.bf16.mxu0 %v3403_v23  ;;  %v3453_v22 = vld [vmem:[#allocation12 + $0x12c] ss:$28 sps:$4 sm:$0xff]  }
 0x217   : > { %1673 = vmatprep.mubr.bf16.mxu1 %v3863_v2  ;;  %v3451_v23 = vld [vmem:[#allocation12 + $0x128] ss:$28 sps:$4 sm:$0xff]  }
 0x219   : > { %1644 = vmatpush1.bf16.msra.mxu1 %v3392_v24  ;;  %1607 = vmatpush1.bf16.msra.mxu0 %v3401_v25  ;;  %v3454_v24 = vld [vmem:[#allocation12 + $0x130] ss:$28 sps:$4 sm:$0xff]   ;;  %v3457_v25 = vld [vmem:[#allocation12 + $0x164] ss:$28 sps:$4 sm:$0xff]  }
 0x21a   : > { %1645 = vmatprep.subr.bf16.mxu1 %v3400_v26  ;;  %1608 = vmatprep.subr.bf16.mxu0 %v3409_v30  ;;  %v3455_v26 = vld [vmem:[#allocation12 + $0x160] ss:$28 sps:$4 sm:$0xff]  }
 0x21b   : > { %v3462_v30 = vld [vmem:[#allocation12 + $0x1a0] ss:$28 sps:$4 sm:$0xff]  }
 0x21d   : > { %1646 = vmatpush1.bf16.msra.mxu1 %v3398_v27  ;;  %1609 = vmatpush1.bf16.msra.mxu0 %v3407_v32  ;;  %v3458_v27 = vld [vmem:[#allocation12 + $0x168] ss:$28 sps:$4 sm:$0xff]  }
 0x21e   : > { %1647 = vmatprep.subr.bf16.mxu1 %v3406_v28  ;;  %1610 = vmatprep.subr.bf16.mxu0 %v3415_v34  ;;  %v3461_v28 = vld [vmem:[#allocation12 + $0x19c] ss:$28 sps:$4 sm:$0xff]  }
 0x21f   : > { %v3466_v34 = vld [vmem:[%s4732_s9 + $0x18] sm:$0xff]  }
 0x221   : > { %1648 = vmatpush1.bf16.msra.mxu1 %v3404_v29  ;;  %1611 = vmatpush1.bf16.msra.mxu0 %v3413_v36  ;;  %v3459_v29 = vld [vmem:[#allocation12 + $0x198] ss:$28 sps:$4 sm:$0xff]  }
 0x222   : > { %1649 = vmatprep.subr.bf16.mxu1 %v3412_v31  ;;  %1612 = vmatprep.subr.bf16.mxu0 %v3421_v38  ;;  %v4365_v31 = vld [vmem:[#allocation16] sm:$0x3] }
 0x223   : > { %v1928_v32 = vrot.slane %v4365_v31, %v755_v51  ;;  %v3465_v51 = vld [vmem:[%s4732_s9 + $0x10] sm:$0xff]  }
 0x225   : > { %1650 = vmatpush1.bf16.msra.mxu1 %v3410_v33  ;;  %1613 = vmatpush1.bf16.msra.mxu0 %v3419_v40  ;;  %v3463_v33 = vld [vmem:[%s4732_s9] sm:$0xff]  }
 0x226   : > { %1651 = vmatprep.subr.bf16.mxu1 %v3418_v35  ;;  %1614 = vmatprep.subr.bf16.mxu0 %v3427_v42  ;;  %v2041_v35 = vmul.f32 %v4309_v7, %v4309_v7 }
 0x228   : > { %v2042_v36 = vsel %vm809_vm0, %v2041_v35, 0.0 }
 0x229   : > { %1652 = vmatpush1.bf16.msra.mxu1 %v3416_v37  ;;  %1615 = vmatpush1.bf16.msra.mxu0 %v3425_v44  ;;  %v1859_v37 = vsel %vm1858_vm5, 1.0, %v3864_v47  ;;  %vm2313_vm5 = vcmp.ge.f32.partialorder %v4345_v50, 7.0 }
 0x22a   : > { %1653 = vmatprep.subr.bf16.mxu1 %v3424_v39  ;;  %1682 = vmatprep.subr.bf16.mxu0 %v3433_v46 }
 0x22b   : > { %2043 = vadd.xlane.f32.xlu1 %v2042_v36 }
 0x22d   : > { %1654 = vmatpush1.bf16.msra.mxu1 %v3422_v41 }
 0x22e   : > { %1655 = vmatprep.subr.bf16.mxu1 %v3430_v43 }
 0x231   : > { %1656 = vmatpush1.bf16.msra.mxu1 %v3428_v45 }
 0x232   : > { %3100 = vmatprep.subr.bf16.mxu1 %v3864_v47 }
 0x23c   : > { %1862 = vperm.xlu1 %3318, %v1859_v37  }
 0x287   : > { %v3315_v38 = vpop.permute.xlu0 %3314 }
 0x288   : > { %v4398_v40 = vunpack.i.h.bf16 %v3315_v38 }
 0x28b   : > { %v4396_v39 = vpop.permute.xlu0 %1889 }
 0x2df   : > { %v3043_v56 = vpop.f32.mrb[0].mxu0 }
 0x2e0   : > { %v3044_v57 = vpop.f32.mrb[1].mxu0 }
 0x2e1   : > { %v3045_v58 = vadd.f32 %v3044_v57, %v3043_v56  ;;  %v3046_v59 = vpop.f32.mrb[2].mxu0 }
 0x2e2   : > { %v3047_v60 = vpop.f32.mrb[3].mxu0  ;;  %v2999_v59 = vld [vmem:[#allocation13] ss:$0 sm:$0xff] }
 0x2e3   : > { %v1201_v0 = vadd.f32 %v3045_v58, %v2910_v61 }
 0x2e7   : > { %v3065_v62 = vpop.f32.mrb[8].mxu1 }
 0x2e8   : > { %v3066_v63 = vpop.f32.mrb[9].mxu1 }
 0x2e9   : > { %v3067_v1 = vadd.f32 %v3066_v63, %v3065_v62  ;;  %v3068_v3 = vpop.f32.mrb[10].mxu1 }
 0x2ea   : > { %v3069_v4 = vpop.f32.mrb[11].mxu1 }
 0x2eb   : > { %v1241_v5 = vadd.f32 %v3067_v1, %v1201_v0 }
 0x2ed   : > { %v1246_v6 = vmax.f32 %v1241_v5, 0.0 }
 0x2ef   : > { %v1247_v10 = vpack.c.bf16 %v1246_v6, %v1246_v6 }
 0x2f1   : > { %1633 = vmatmul.mubr.bf16.vlgmr.msra.gmra.mrb[4].mxu0 %v1247_v10  ;;  %1674 = vmatmul.mubr.bf16.vlgmr.msra.gmra.mrb[12].mxu1 %v1247_v10 }
 0x2f2   : > { %1683 = vmatpush1.bf16.msra.mxu0 %v3431_v8  ;;  %3101 = vmatpush3.bf16.msra.mxu1 %v3434_v9  ;;  %v3000_v9 = vld [vmem:[#allocation15] ss:$0 sm:$0xff] }
 0x2f3   : > { %1684 = vmatprep.subr.bf16.mxu0 %v3437_v11  ;;  %3102 = vmatprep.subr.bf16.mxu1 %v3864_v47 }
 0x2f4   : > { %1714 = vmatprep.mubr.bf16.mxu0 %v3863_v2  ;;  %3116 = vmatprep.mubr.msk.bf16.mxu1 %vm3865_vm4, %v3864_v47  ;;  %v3449_v2 = vld [vmem:[#allocation12 + $0xf4] ss:$28 sps:$4 sm:$0xff]  }
 0x2f6   : > { %1685 = vmatpush1.bf16.msra.mxu0 %v3435_v12  ;;  %3103 = vmatpush3.bf16.msra.mxu1 %v3438_v13 }
 0x2f7   : > { %1686 = vmatprep.subr.bf16.mxu0 %v3441_v14  ;;  %3104 = vmatprep.subr.bf16.mxu1 %v3864_v47  ;;  %v4413_v14 = vunpack.i.l.bf16 %v3315_v38  ;;  %v2123_v38 = vld [vmem:[#allocation7] sm:$0xff] }
 0x2fa   : > { %1687 = vmatpush1.bf16.msra.mxu0 %v3439_v15  ;;  %3105 = vmatpush3.bf16.msra.mxu1 %v3442_v16 }
 0x2fb   : > { %1688 = vmatprep.subr.bf16.mxu0 %v3445_v17  ;;  %3106 = vmatprep.subr.bf16.mxu1 %v3864_v47 }
 0x2fe   : > { %1689 = vmatpush1.bf16.msra.mxu0 %v3443_v18  ;;  %3107 = vmatpush3.bf16.msra.mxu1 %v3446_v19 }
 0x2ff   : > { %1690 = vmatprep.subr.bf16.mxu0 %v3449_v2  ;;  %3108 = vmatprep.subr.bf16.mxu1 %v3864_v47 }
 0x302   : > { %1691 = vmatpush1.bf16.msra.mxu0 %v3447_v20  ;;  %3109 = vmatpush3.bf16.msra.mxu1 %v3450_v21 }
 0x303   : > { %1692 = vmatprep.subr.bf16.mxu0 %v3453_v22  ;;  %3110 = vmatprep.subr.bf16.mxu1 %v3864_v47  ;;  %v2044_v22 = vpop.xlane.xlu1 %2043 }
 0x306   : > { %1693 = vmatpush1.bf16.msra.mxu0 %v3451_v23  ;;  %3111 = vmatpush3.bf16.msra.mxu1 %v3454_v24  ;;  %v2045_v23 = vmax.f32 %v2044_v22, 1e-12 }
 0x307   : > { %1694 = vmatprep.subr.bf16.mxu0 %v3457_v25  ;;  %3112 = vmatprep.subr.bf16.mxu1 %v3864_v47 }
 0x308   : > { %3473 = vrsqrt.f32 %v2045_v23 }
 0x30a   : > { %1695 = vmatpush1.bf16.msra.mxu0 %v3455_v26  ;;  %3113 = vmatpush3.bf16.msra.mxu1 %v3458_v27  ;;  %v4422_v26 = vpop.permute.xlu1 %1862 }
 0x30b   : > { %1696 = vmatprep.subr.bf16.mxu0 %v3461_v28  ;;  %3114 = vmatprep.subr.bf16.mxu1 %v3864_v47 }
 0x30e   : > { %1697 = vmatpush1.bf16.msra.mxu0 %v3459_v29  ;;  %3115 = vmatpush3.bf16.msra.mxu1 %v3462_v30 }
 0x30f   : > { %3120 = vmatprep.subr.bf16.mxu0 %v3864_v47 }
 0x311   : > { %1715 = vmatmul.mubr.bf16.vlgmr.msra.gmra.mrb[8].mxu0 %v1247_v10  ;;  %3117 = vmatmul.mubr.bf16.vlgmr.msra.gmra.mrb[16].mxu1 %v1247_v10 }
 0x312   : > { %3128 = vmatprep.mubr.msk.bf16.mxu0 %vm3865_vm4, %v3864_v47  ;;  %3007 = vmatprep.mubr.msk.f32.mxu1 %vm809_vm0, %v1928_v32  ;;  %v3474_v29 = vpop.eup %3473 }
 0x313   : > { %3121 = vmatpush3.bf16.msra.mxu0 %v3463_v33 }
 0x314   : > { %3122 = vmatprep.subr.bf16.mxu0 %v3864_v47 }
 0x317   : > { %3123 = vmatpush3.bf16.msra.mxu0 %v3464_v48 }
 0x318   : > { %3124 = vmatprep.subr.bf16.mxu0 %v3864_v47 }
 0x31b   : > { %3125 = vmatpush3.bf16.msra.mxu0 %v3465_v51  ;;  %v1924_v51 = vrot.slane %v4365_v31, %v4331_v49 }
 0x31c   : > { %3126 = vmatprep.subr.bf16.mxu0 %v3864_v47 }
 0x31f   : > { %3127 = vmatpush3.bf16.msra.mxu0 %v3466_v34  ;;  %v3479_v34 = vld [vmem:[%s4271_s18] sm:$0xff] }
 0x320   : > { %3143 = vmatprep.subr.bf16.mxu0 %v3864_v47  ;;  %v2047_v35 = vmul.f32 %v3479_v34, %v3474_v29 }
 0x3c4   : > { %v4400_v41 = vpop.f32.mrb[4].mxu0  ;;  %v1675_v42 = vpop.f32.mrb[12].mxu1 }
 0x3c5   : > { %v1636_v43 = vpop.f32.mrb[5].mxu0  ;;  %v1677_v44 = vpop.f32.mrb[13].mxu1  ;;  %v2010_v45 = vrot.slane %v1675_v42, 7 }
 0x3c6   : > { %v2007_v7 = vrot.slane %v1636_v43, 6  ;;  %v1638_v46 = vpop.f32.mrb[6].mxu0  ;;  %v1679_v52 = vpop.f32.mrb[14].mxu1 }
 0x3c7   : > { %v1639_v53 = vpop.f32.mrb[7].mxu0  ;;  %v1680_v54 = vpop.f32.mrb[15].mxu1  ;;  %v2011_v57 = vmul.f32 %v2010_v45, %v4396_v39  ;;  %v2025_v46 = vsel %vm2024_vm10, 1.0, %v3864_v47  ;;  %v2291_v52 = vsel %vm2290_vm11, 1.0, %v3864_v47 }
 0x3c8   : > { %v2008_v55 = vmul.f32 %v4398_v40, %v2007_v7  ;;  %v2150_v7 = vpack.c.bf16 %v4400_v41, %v4400_v41  ;;  %v2299_v53 = vsel %vm2298_vm12, 1.0, %v3864_v47 }
 0x3c9   : > { %v3329_v54 = vpack.i.bf16 %v2299_v53, %v2291_v52 }
 0x3ca   : > { %v2009_v56 = vadd.f32 %v2008_v55, %v1677_v44 }
 0x3cc   : > { %v4404_v58 = vadd.f32 %v2011_v57, %v2009_v56 }
 0x3e4   : > { %v4406_v60 = vpop.f32.mrb[8].mxu0  ;;  %v1757_v61 = vpop.f32.mrb[16].mxu1 }
 0x3e5   : > { %v1770_v62 = vadd.f32 %v2999_v59, %v1757_v61  ;;  %v4408_v63 = vpop.f32.mrb[9].mxu0  ;;  %v3118_v0 = vpop.f32.mrb[17].mxu1 }
 0x3e6   : > { %v1720_v1 = vpop.f32.mrb[10].mxu0  ;;  %v1760_v3 = vpop.f32.mrb[18].mxu1 }
 0x3e7   : > { %v1771_v4 = vmax.f32 %v1770_v62, 0.0  ;;  %v1721_v5 = vpop.f32.mrb[11].mxu0  ;;  %v3119_v6 = vpop.f32.mrb[19].mxu1  ;;  %v2015_v1 = vsel %vm2014_vm14, 1.0, %v3864_v47  ;;  %v2236_v3 = vsel %vm2235_vm15, 1.0, %v3864_v47 }
 0x3e8   : > { %v2268_v6 = vsel %vm2267_vm2, 1.0, %v3864_v47 }
 0x3e9   : > { %v1772_v8 = vpack.c.bf16 %v1771_v4, %v1771_v4  ;;  %v2253_v4 = vsel %vm2252_vm1, 1.0, %v3864_v47 }
 0x3ea   : > { %v3319_v5 = vpack.i.bf16 %v2253_v4, %v2236_v3 }
 0x3eb   : > { %3129 = vmatmul.mubr.msk.bf16.vlgmr.msra.gmra.mrb[12].mxu0 %vm1812_vm6, %v1772_v8  ;;  %v2276_v8 = vsel %vm2275_vm3, 1.0, %v3864_v47 }
 0x3ec   : > { %3155 = vmatprep.mubr.msk.bf16.mxu0 %vm3865_vm4, %v3864_v47 }
 0x4be   : > { %v1850_v10 = vpop.f32.mrb[12].mxu0 }
 0x4bf   : > { %v1851_v11 = vadd.f32 %v3000_v9, %v1850_v10  ;;  %v3130_v12 = vpop.f32.mrb[13].mxu0  ;;  %v3324_v9 = vpack.i.bf16 %v2276_v8, %v2268_v6  ;;  %v2314_v10 = vsel %vm2313_vm5, 1.0, %v3864_v47 }
 0x4c0   : > { %v1853_v13 = vpop.f32.mrb[14].mxu0 }
 0x4c1   : > { %v1856_v15 = vmax.f32 %v1851_v11, 0.0  ;;  %v3131_v16 = vpop.f32.mrb[15].mxu0 }
 0x4c3   : > { %3006 = vmatprep.subr.msk.mxu1 %vm809_vm0, %v1856_v15  ;;  %v1866_v17 = vrot.slane %v1856_v15, 5  ;;  %v1875_v19 = vrot.slane %v1856_v15, 6  ;;  %v1884_v20 = vrot.slane %v1856_v15, 7  ;;  %v1857_v25 = vrot.slane %v1856_v15, 4 }
 0x4c5   : > { %v1874_v18 = vmul.f32 %v4413_v14, %v1866_v17  ;;  %v1883_v2 = vmul.f32 %v4398_v40, %v1875_v19  ;;  %v1892_v21 = vmul.f32 %v4396_v39, %v1884_v20  ;;  %v1865_v28 = vmul.f32 %v4422_v26, %v1857_v25 }
 0x4c6   : > { %v2013_v19 = vrot.slane %v4406_v60, 1 }
 0x4c7   : > { %1894 = vrot.lane.b32.xlu0 %v1874_v18, %s3866_s21 }
 0x4cb   : > { %1898 = vrot.lane.b32.xlu0 %v1883_v2, %s3867_s29 }
 0x4cf   : > { %1902 = vrot.lane.b32.xlu0 %v1892_v21, %s3868_s17  ;;  %v2023_v21 = vrot.slane %v4408_v63, 2 }
 0x539   : > { %v1895_v24 = vpop.permute.xlu0 %1894 }
 0x53a   : > { %v1905_v30 = vsel %vm809_vm0, %v1865_v28, %v1895_v24 }
 0x53d   : > { %v1899_v27 = vpop.permute.xlu0 %1898 }
 0x53e   : > { %v1906_v32 = vsel %vm1812_vm6, %v1905_v30, %v1899_v27 }
 0x541   : > { %v1903_v33 = vpop.permute.xlu0 %1902 }
 0x542   : > { %v1908_v48 = vsel %vm1907_vm7, %v1906_v32, %v1903_v33 }
 0x543   : > { %1936 = vmatpush1.xpose.msra.mxu1 %v1908_v48 }
 0x544   : > { %3132 = vmatprep.subr.mxu1 %v3864_v47 }
 0x546   : > { %2000 = vmatmul.mubr.f32.vlgmr.msra.gmra.mrb[20].mxu1 %v1924_v51  ;;  %v3008_v51 = vld [vmem:[#allocation18] ss:$0 sm:$0xff] }
 0x547   : > { %3133 = vmatpush3.xpose.msk.msra.mxu1 %vm809_vm0, %v2047_v35  ;;  %3134 = vmatprep.mubr.msk.f32.mxu1 %vm3865_vm4, %v3864_v47 }
 0x548   : > { %3137 = vmatprep.subr.bf16.mxu1 %v3864_v47 }
 0x54a   : > { %3135 = vmatmul.mubr.msk.f32.vlgmr.msra.gmra.mrb[22].mxu1 %vm809_vm0, %v2047_v35 }
 0x54b   : > { %3139 = vmatprep.mubr.msk.bf16.mxu1 %vm3865_vm4, %v3864_v47 }
 0x619   : > { %v4439_v36 = vpop.f32.mrb[20].mxu1 }
 0x61a   : > { %v2003_v31 = vpop.f32.mrb[21].mxu1 }
 0x61d   : > { %v2117_v37 = vpop.f32.mrb[22].mxu1 }
 0x61e   : > { %vm2121_vm8 = vcmp.gt.f32.partialorder %v2117_v37, 0.7  ;;  %v3136_v42 = vpop.f32.mrb[23].mxu1 }
 0x61f   : > { %v2122_v43 = vsel %vm2121_vm8, %v2117_v37, 0.0  ;;  %vm2321_vm8 = vcmp.le.f32.partialorder %v4345_v50, 0.0 }
 0x620   : > { %v2124_v44 = vadd.f32 %v2123_v38, %v2122_v43  ;;  %v2322_v11 = vsel %vm2321_vm8, 1.0, %v3864_v47 }
 0x621   : > { %v3334_v12 = vpack.i.bf16 %v2322_v11, %v2314_v10 }
 0x622   : > { %v2126_v45 = vsel %vm2125_vm9, %v2124_v44, -inf }
 0x623   : > { %2127 = vmax.xlane.f32.xlu0 %v2126_v45 }
 0x639   : > { %2152 = vrot.lane.b32.xlu0 %v2150_v7, %s3868_s17 }
 0x63d   : > { %2028 = vperm.xlu0 %3312, %v2025_v46  }
 0x641   : > { %2207 = vrot.lane.b32.xlu0 %v4400_v41, %s3867_s29 }
 0x645   : > { %3330 = vperm.xlu0 %3312, %v3329_v54  }
 0x6b0   : > { %v2128_v55 = vpop.xlane.xlu0 %2127 }
 0x6b1   : > { %v2129_v56 = vsub.f32 %v2124_v44, %v2128_v55 }
 0x6b3   : > { %v2130_v57 = vmul.f32 1.442695, %v2129_v56 }
 0x6b4   : > { %v2153_v59 = vpop.permute.xlu0 %2152 }
 0x6b5   : > { %3475 = vpow2.f32 %v2130_v57  ;;  %v2163_v61 = vsel %vm2161_vm13, %v2153_v59, 0 }
 0x6b6   : > { %3138 = vmatpush3.bf16.msra.mxu1 %v2163_v61 }
 0x6b7   : > { %3159 = vmatprep.subr.bf16.mxu1 %v3864_v47 }
 0x6bc   : > { %v4470_v13 = vpop.permute.xlu0 %2028 }
 0x6bd   : > { %v2031_v28 = vmul.f32 %v4470_v13, %v2023_v21 }
 0x6bf   : > { %v3476_v62 = vpop.eup %3475 }
 0x6c0   : > { %v2132_v0 = vsel %vm2125_vm9, %v3476_v62, 0.0  ;;  %v4472_v15 = vpop.permute.xlu0 %2207 }
 0x6c1   : > { %2133 = vadd.xlane.f32.xlu1 %v2132_v0  ;;  %v2210_v17 = vrot.slane %v4472_v15, 7  ;;  %v2221_v18 = vrot.slane %v4472_v15, 6  ;;  %v2223_v50 = vrot.slane %v4472_v15, 2  ;;  %v2212_v2 = vrot.slane %v4472_v15, 1 }
 0x6c2   : > { %v2232_v32 = vrot.slane %v4472_v15, 5  ;;  %v2234_v33 = vrot.slane %v4472_v15, 3  ;;  %v2250_v48 = vrot.slane %v4472_v15, 4 }
 0x6c3   : > { %v2211_v24 = vmul.f32 %v2210_v17, %v4396_v39  ;;  %v2222_v25 = vmul.f32 %v4398_v40, %v2221_v18  ;;  %v2224_v27 = vmul.f32 %v2223_v50, %v4470_v13 }
 0x6c4   : > { %v4488_v29 = vpop.permute.xlu0 %3330  ;;  %v2233_v46 = vmul.f32 %v4413_v14, %v2232_v32  ;;  %v2251_v57 = vmul.f32 %v2250_v48, %v4422_v26 }
 0x6c5   : > { %v3333_v38 = vunpack.i.h.bf16 %v4488_v29  ;;  %v2225_v42 = vadd.f32 %v2224_v27, %v2222_v25  ;;  %v3472_v25 = vld [vmem:[%s4737_s14 + $0x28] sm:$0xff]  }
 0x6c7   : > { %v2305_v59 = vmul.f32 %v3333_v38, %v2221_v18 }
 0x6d2   : > { %2018 = vperm.xlu1 %3318, %v2015_v1  }
 0x6d6   : > { %3320 = vperm.xlu1 %3318, %v3319_v5  }
 0x6da   : > { %3325 = vperm.xlu1 %3318, %v3324_v9  }
 0x6de   : > { %3335 = vperm.xlu1 %3318, %v3334_v12  }
 0x74e   : > { %v2134_v16 = vpop.xlane.xlu1 %2133 }
 0x74f   : > { %3477 = vrcp.f32 %v2134_v16 }
 0x752   : > { %v4479_v20 = vpop.permute.xlu1 %2018 }
 0x753   : > { %v2021_v22 = vmul.f32 %v4479_v20, %v2013_v19  ;;  %v2213_v23 = vmul.f32 %v2212_v2, %v4479_v20 }
 0x755   : > { %v2022_v60 = vadd.f32 %v2021_v22, %v4404_v58  ;;  %v2214_v30 = vadd.f32 %v2213_v23, %v2211_v24  ;;  %v3332_v58 = vunpack.i.l.bf16 %v4488_v29  ;;  %v3469_v22 = vld [vmem:[%s4737_s14 + $0x10] sm:$0xff]   ;;  %v3470_v23 = vld [vmem:[%s4737_s14 + $0x18] sm:$0xff]   ;;  %v3471_v24 = vld [vmem:[%s4737_s14 + $0x20] sm:$0xff]  }
 0x756   : > { %v4492_v63 = vpop.permute.xlu1 %3320 }
 0x757   : > { %v3323_v34 = vunpack.i.h.bf16 %v4492_v63  ;;  %v3322_v35 = vunpack.i.l.bf16 %v4492_v63  ;;  %v2215_v31 = vmul.f32 0.36787945, %v2214_v30  ;;  %v2032_v37 = vadd.f32 %v2031_v28, %v2022_v60 }
 0x758   : > { %v2297_v61 = vmul.f32 %v3332_v58, %v2223_v50 }
 0x759   : > { %v3478_v43 = vpop.eup %3477  ;;  %v2242_v44 = vmul.f32 %v3322_v35, %v2234_v33  ;;  %v2259_v45 = vmul.f32 %v3323_v34, %v2250_v48  ;;  %2217 = vrot.lane.b32.xlu1 %v2215_v31, %s3867_s29  ;;  %v4505_v7 = vadd.f32 %v3008_v51, %v2032_v37  ;;  %v2139_v51 = vsel %vm809_vm0, %v4400_v41, 0.0 }
 0x75a   : > { %v2137_v52 = vmul.f32 %v3478_v43, %v3476_v62  ;;  %v4508_v53 = vpop.permute.xlu1 %3325  ;;  %v2226_v62 = vmul.f32 0.13533528, %v2225_v42  ;;  %v2306_v11 = vadd.f32 %v2305_v59, %v2297_v61  ;;  %v2140_v37 = vrot.slane %v2139_v51, 4 }
 0x75b   : > { %v3328_v54 = vunpack.i.h.bf16 %v4508_v53  ;;  %v3327_v55 = vunpack.i.l.bf16 %v4508_v53  ;;  %2155 = vrot.lane.b32.xlu0 %v4505_v7, %s3868_s17  ;;  %v2243_v56 = vadd.f32 %v2242_v44, %v2233_v46  ;;  %v2260_v5 = vadd.f32 %v2259_v45, %v2251_v57 }
 0x75c   : > { %v4519_v0 = vpack.c.bf16 %v2137_v52, %v2137_v52  ;;  %v2307_v21 = vmul.f32 0.0024787523, %v2306_v11  ;;  %v2141_v45 = vadd.f32 %v2140_v37, %v2139_v51 }
 0x75d   : > { %v2274_v1 = vmul.f32 %v3327_v55, %v2234_v33  ;;  %v2282_v3 = vmul.f32 %v3328_v54, %v2232_v32  ;;  %v2244_v4 = vmul.f32 0.049787067, %v2243_v56  ;;  %v2261_v16 = vmul.f32 0.01831564, %v2260_v5 }
 0x75e   : > { %v4525_v6 = vpop.permute.xlu1 %3335  ;;  %3140 = vmatmul.mubr.msk.bf16.vlgmr.msra.gmra.mrb[24].mxu1 %vm2125_vm9, %v4519_v0  ;;  %v2142_v56 = vrot.slane %v2141_v45, 2 }
 0x75f   : > { %v3338_v8 = vunpack.i.h.bf16 %v4525_v6  ;;  %v3337_v9 = vunpack.i.l.bf16 %v4525_v6  ;;  %2228 = vrot.lane.b32.xlu0 %v2226_v62, %s3867_s29  ;;  %2246 = vrot.lane.b32.xlu1 %v2244_v4, %s3867_s29  ;;  %v2283_v10 = vadd.f32 %v2282_v3, %v2274_v1 }
 0x760   : > { %3161 = vmatprep.mubr.msk.bf16.mxu1 %vm3865_vm4, %v3864_v47  ;;  %v2143_v61 = vadd.f32 %v2142_v56, %v2141_v45 }
 0x761   : > { %v2320_v12 = vmul.f32 %v3337_v9, %v2212_v2  ;;  %v2328_v15 = vmul.f32 %v3338_v8, %v2210_v17  ;;  %v2284_v18 = vmul.f32 0.006737947, %v2283_v10  ;;  %v3467_v2 = vld [vmem:[%s4737_s14] sm:$0xff]   ;;  %v3468_v17 = vld [vmem:[%s4737_s14 + $0x8] sm:$0xff]  }
 0x762   : > { %3144 = vmatpush3.bf16.msra.mxu0 %v3467_v2  ;;  %v2144_v3 = vrot.slane %v2143_v61, 1 }
 0x763   : > { %2263 = vrot.lane.b32.xlu0 %v2261_v16, %s3867_s29  ;;  %2286 = vrot.lane.b32.xlu1 %v2284_v18, %s3867_s29  ;;  %v2329_v50 = vadd.f32 %v2328_v15, %v2320_v12 }
 0x764   : > { %3145 = vmatprep.subr.bf16.mxu0 %v3864_v47  ;;  %v2145_v10 = vadd.f32 %v2144_v3, %v2143_v61 }
 0x765   : > { %v2330_v19 = vmul.f32 0.000911882, %v2329_v50 }
 0x766   : > { %3146 = vmatpush3.bf16.msra.mxu0 %v3468_v17  ;;  %v2147_v15 = vmul.f32 0.125, %v2145_v10 }
 0x767   : > { %2332 = vrot.lane.b32.xlu1 %v2330_v19, %s3867_s29  ;;  %2309 = vrot.lane.b32.xlu0 %v2307_v21, %s3867_s29 }
 0x768   : > { %3147 = vmatprep.subr.bf16.mxu0 %v3864_v47  ;;  %v2148_v16 = vadd.f32 %v2147_v15, %v4505_v7 }
 0x76a   : > { %3148 = vmatpush3.bf16.msra.mxu0 %v3469_v22  ;;  %v2149_v18 = vmax.f32 %v2148_v16, 0.0 }
 0x76b   : > { %3149 = vmatprep.subr.bf16.mxu0 %v3864_v47 }
 0x76e   : > { %3150 = vmatpush3.bf16.msra.mxu0 %v3470_v23 }
 0x76f   : > { %3151 = vmatprep.subr.bf16.mxu0 %v3864_v47 }
 0x772   : > { %3152 = vmatpush3.bf16.msra.mxu0 %v3471_v24 }
 0x773   : > { %3153 = vmatprep.subr.bf16.mxu0 %v3864_v47 }
 0x776   : > { %3154 = vmatpush3.bf16.msra.mxu0 %v3472_v25 }
 0x7cb   : > { %v2218_v31 = vpop.permute.xlu1 %2217 }
 0x7cc   : > { %v2220_v43 = vadd.f32 %v2218_v31, %v4400_v41 }
 0x7cd   : > { %v2156_v27 = vpop.permute.xlu0 %2155 }
 0x7d1   : > { %v2229_v42 = vpop.permute.xlu0 %2228  ;;  %v2247_v46 = vpop.permute.xlu1 %2246 }
 0x7d2   : > { %v2231_v44 = vadd.f32 %v2229_v42, %v2220_v43 }
 0x7d4   : > { %v2249_v52 = vadd.f32 %v2247_v46, %v2231_v44 }
 0x7d5   : > { %v2264_v57 = vpop.permute.xlu0 %2263  ;;  %v2287_v62 = vpop.permute.xlu1 %2286 }
 0x7d6   : > { %v2266_v59 = vadd.f32 %v2264_v57, %v2249_v52 }
 0x7d8   : > { %v2289_v1 = vadd.f32 %v2287_v62, %v2266_v59 }
 0x7d9   : > { %v2310_v4 = vpop.permute.xlu0 %2309  ;;  %v2333_v11 = vpop.permute.xlu1 %2332 }
 0x7da   : > { %v2312_v5 = vadd.f32 %v2310_v4, %v2289_v1 }
 0x7dc   : > { %v2335_v12 = vadd.f32 %v2333_v11, %v2312_v5 }
 0x7de   : > { %v2336_v41 = vadd.f32 %v2335_v12, %v4505_v7 }
 0x7e0   : > { %v2337_v50 = vmax.f32 %v2336_v41, 0.0 }
 0x831   : > { %v2199_v28 = vpop.f32.mrb[24].mxu1 }
 0x832   : > { %v2200_v60 = vadd.f32 %v2199_v28, %v2156_v27  ;;  %v3141_v30 = vpop.f32.mrb[25].mxu1  ;;  %v4585_v27 = vld [vmem:[%s4789_s4] ss:$0 sm:$0xff] }
 0x833   : > { %v2202_v32 = vpop.f32.mrb[26].mxu1 }
 0x834   : > { %v2205_v33 = vmax.f32 %v2200_v60, 0.0  ;;  %v3142_v48 = vpop.f32.mrb[27].mxu1 }
 0x836   : > { %2339 = vrot.lane.b32.xlu0 %v2205_v33, %s3866_s21 }
 0x8a8   : > { %v2340_v19 = vpop.permute.xlu0 %2339 }
 0x8a9   : > { %v2342_v21 = vsel %vm809_vm0, %v2149_v18, %v2340_v19 }
 0x8aa   : > { %v2343_v2 = vsel %vm1812_vm6, %v2342_v21, %v2337_v50 }
 0x8ab   : > { %v2344_v17 = vpack.c.bf16 %v2343_v2, %v2343_v2 }
 0x8ad   : > { %3156 = vmatmul.mubr.msk.bf16.vlgmr.msra.gmra.mrb[16].mxu0 %vm1907_vm7, %v2344_v17 }
 0x980   : > { %v4575_v22 = vpop.f32.mrb[16].mxu0 }
 0x981   : > { %2507 = vrot.lane.b32.xlu0 %v4575_v22, %s3867_s29  ;;  %v3157_v23 = vpop.f32.mrb[17].mxu0  ;;  %v2454_v24 = vpack.c.bf16 %v4575_v22, %v4575_v22 }
 0x982   : > { %v2433_v7 = vpop.f32.mrb[18].mxu0 }
 0x983   : > { %2456 = vrot.lane.b32.xlu1 %v2454_v24, %s3868_s17  ;;  %v3158_v25 = vpop.f32.mrb[19].mxu0 }
 0x987   : > { %2458 = vrot.lane.b32.xlu1 %v4585_v27, %s3868_s17 }
 0x9f3   : > { %v2508_v28 = vpop.permute.xlu0 %2507 }
 0x9f4   : > { %v2510_v60 = vrot.slane %v2508_v28, 7  ;;  %v2512_v30 = vrot.slane %v2508_v28, 1  ;;  %v2521_v32 = vrot.slane %v2508_v28, 6  ;;  %v2523_v33 = vrot.slane %v2508_v28, 2 }
 0x9f5   : > { %v2457_v48 = vpop.permute.xlu1 %2456  ;;  %v2532_v51 = vrot.slane %v2508_v28, 5  ;;  %v2534_v31 = vrot.slane %v2508_v28, 3  ;;  %v2543_v37 = vrot.slane %v2508_v28, 4 }
 0x9f6   : > { %v2462_v42 = vsel %vm2161_vm13, %v2457_v48, 0  ;;  %v2511_v43 = vmul.f32 %v2510_v60, %v4396_v39  ;;  %v2513_v44 = vmul.f32 %v2512_v30, %v4479_v20  ;;  %v2522_v45 = vmul.f32 %v4398_v40, %v2521_v32 }
 0x9f7   : > { %3160 = vmatpush3.bf16.msra.mxu1 %v2462_v42  ;;  %v2524_v46 = vmul.f32 %v2523_v33, %v4470_v13  ;;  %v2533_v52 = vmul.f32 %v4413_v14, %v2532_v51  ;;  %v2535_v56 = vmul.f32 %v3322_v35, %v2534_v31  ;;  %v2544_v57 = vmul.f32 %v2543_v37, %v4422_v26 }
 0x9f8   : > { %v2514_v59 = vadd.f32 %v2513_v44, %v2511_v43  ;;  %v2545_v61 = vmul.f32 %v3323_v34, %v2543_v37  ;;  %3165 = vmatprep.subr.mxu1 %v3864_v47  ;;  %v2553_v14 = vmul.f32 %v3327_v55, %v2534_v31  ;;  %v2554_v13 = vmul.f32 %v3328_v54, %v2532_v51 }
 0x9f9   : > { %v2525_v39 = vadd.f32 %v2524_v46, %v2522_v45  ;;  %v2536_v20 = vadd.f32 %v2535_v56, %v2533_v52  ;;  %v2562_v63 = vmul.f32 %v3332_v58, %v2523_v33  ;;  %v2563_v34 = vmul.f32 %v3333_v38, %v2521_v32  ;;  %v2459_v6 = vpop.permute.xlu1 %2458  ;;  %v2590_v33 = vld [vmem:[#allocation3] sm:$0x1] }
 0x9fa   : > { %3162 = vmatmul.mubr.msk.bf16.vlgmr.msra.gmra.mrb[28].mxu1 %vm2125_vm9, %v4519_v0  ;;  %v2515_v40 = vmul.f32 0.36787945, %v2514_v59  ;;  %v2546_v26 = vadd.f32 %v2545_v61, %v2544_v57  ;;  %v2555_v55 = vadd.f32 %v2554_v13, %v2553_v14  ;;  %v2571_v53 = vmul.f32 %v3337_v9, %v2512_v30  ;;  %v1910_v9 = vld [vmem:[#allocation2] sm:$0x1] }
 0x9fb   : > { %v2526_v35 = vmul.f32 0.13533528, %v2525_v39  ;;  %3167 = vmatprep.mubr.msk.f32.mxu1 %vm3865_vm4, %v3864_v47  ;;  %v2537_v0 = vmul.f32 0.049787067, %v2536_v20  ;;  %v2572_v54 = vmul.f32 %v3338_v8, %v2510_v60  ;;  %v2564_v58 = vadd.f32 %v2563_v34, %v2562_v63 }
 0x9fc   : > { %2517 = vrot.lane.b32.xlu0 %v2515_v40, %s3867_s29  ;;  %v2547_v62 = vmul.f32 0.01831564, %v2546_v26  ;;  %v2556_v29 = vmul.f32 0.006737947, %v2555_v55  ;;  %vm2005_vm4 = vcmask 57344   ;;  %v2437_v48 = vsel %vm809_vm0, %v4575_v22, 0.0 }
 0x9fd   : > { %2528 = vrot.lane.b32.xlu1 %v2526_v35, %s3867_s29  ;;  %v2573_v47 = vadd.f32 %v2572_v54, %v2571_v53  ;;  %v2565_v38 = vmul.f32 0.0024787523, %v2564_v58  ;;  %v2438_v51 = vrot.slane %v2437_v48, 4  ;;  %v2589_v40 = vld [vmem:[%s4790_s15] sm:$0x1] }
 0x9ff   : > { %v2574_v1 = vmul.f32 0.000911882, %v2573_v47 }
 0xa00   : > { %2539 = vrot.lane.b32.xlu0 %v2537_v0, %s3867_s29 }
 0xa01   : > { %2549 = vrot.lane.b32.xlu1 %v2547_v62, %s3867_s29 }
 0xa04   : > { %2558 = vrot.lane.b32.xlu0 %v2556_v29, %s3867_s29 }
 0xa05   : > { %2567 = vrot.lane.b32.xlu1 %v2565_v38, %s3867_s29 }
 0xa08   : > { %2576 = vrot.lane.b32.xlu0 %v2574_v1, %s3867_s29  ;;  %s734_s29 = scalar_lea.vmem [#allocation20], %s4267_s7 }
 0xa09   : > { %s2707_s25 = sshll.u32 %s734_s29, 4  ;;  %s2708_s25 = int_to_ptr.vmem [resolvable:$true] %s2707_s25 }
 0xa0a   : > { %s3734_s4 = scalar_lea.vmem %s2708_s25, 16 }
 0xa0b   : > { %p3735_p5 = scmp.ne.s32.totalorder %s2708_s25, %s3734_s4 }
 0xa0c   : > { %1913 = vperm.xlu0 %3312, %v1910_v9  }
 0xa0d   : > { %p3736_p4 = pnand %p3735_p5, %p4792_p7 }
 0xa0f   : > { %p3737_p1 = pneg %p3736_p4 }
 0xa6e   : > { %v2518_v8 = vpop.permute.xlu0 %2517 }
 0xa6f   : > { %v2520_v3 = vadd.f32 %v2518_v8, %v4575_v22  ;;  %v2529_v4 = vpop.permute.xlu1 %2528 }
 0xa71   : > { %v2531_v5 = vadd.f32 %v2529_v4, %v2520_v3 }
 0xa72   : > { %v2540_v10 = vpop.permute.xlu0 %2539 }
 0xa73   : > { %v2542_v11 = vadd.f32 %v2540_v10, %v2531_v5  ;;  %v2550_v12 = vpop.permute.xlu1 %2549 }
 0xa75   : > { %v2552_v15 = vadd.f32 %v2550_v12, %v2542_v11 }
 0xa76   : > { %v2559_v16 = vpop.permute.xlu0 %2558 }
 0xa77   : > { %v2561_v41 = vadd.f32 %v2559_v16, %v2552_v15  ;;  %v2568_v18 = vpop.permute.xlu1 %2567 }
 0xa79   : > { %v2570_v50 = vadd.f32 %v2568_v18, %v2561_v41 }
 0xa7a   : > { %v2577_v19 = vpop.permute.xlu0 %2576 }
 0xa7b   : > { %v2579_v21 = vadd.f32 %v2577_v19, %v2570_v50 }
 0xa7d   : > { %v2580_v46 = vadd.f32 %v4585_v27, %v2579_v21 }
 0xa7f   : > { %v2581_v56 = vmul.f32 2.0, %v2580_v46 }
 0xa81   : > { %v2582_v22 = vmax.f32 %v2581_v56, 0.0 }
 0xa8b   : > { %v1914_v2 = vpop.permute.xlu0 %1913 }
 0xa8c   : > { %v1919_v17 = vrot.slane %v1914_v2, %v4331_v49 }
 0xa8e   : > { %v2002_v23 = vadd.f32 %v4439_v36, %v1919_v17  ;;  %v2439_v36 = vadd.f32 %v2438_v51, %v2437_v48 }
 0xa90   : > { %2006 = vst.msk [vmem:[%s734_s29] sm:$0x1] %vm2005_vm4, %v2002_v23  ;;  %v2440_v31 = vrot.slane %v2439_v36, 2 }
 0xa92   : > { %v2441_v37 = vadd.f32 %v2440_v31, %v2439_v36 }
 0xa94   : > { %v2442_v42 = vrot.slane %v2441_v37, 1 }
 0xa96   : > { %v2443_v43 = vadd.f32 %v2442_v42, %v2441_v37 }
 0xa98   : > { %v2444_v44 = vmul.f32 0.125, %v2443_v43 }
 0xa9a   : > { %v2451_v45 = vadd.f32 %v4585_v27, %v2444_v44 }
 0xa9c   : > { %v2452_v52 = vmul.f32 2.0, %v2451_v45 }
 0xa9e   : > { %v2453_v57 = vmax.f32 %v2452_v52, 0.0 }
 0xacd   : > { %v2498_v24 = vpop.f32.mrb[28].mxu1 }
 0xace   : > { %v2499_v7 = vadd.f32 %v2498_v24, %v2459_v6  ;;  %v3163_v25 = vpop.f32.mrb[29].mxu1 }
 0xacf   : > { %v2501_v28 = vpop.f32.mrb[30].mxu1 }
 0xad0   : > { %v2504_v60 = vmul.f32 2.0, %v2499_v7  ;;  %v3164_v30 = vpop.f32.mrb[31].mxu1 }
 0xad2   : > { %v2505_v32 = vmax.f32 %v2504_v60, 0.0 }
 0xad4   : > { %2584 = vrot.lane.b32.xlu1 %v2505_v32, %s3866_s21  ;;  %s3869_s21 = smov [#allocation20]  }
 0xad5   : > { %s3738_s17 = sshll.u32 %s3869_s21, 4  ;;  %s3739_s17 = int_to_ptr.vmem [resolvable:$false] %s3738_s17 }
 0xad6   : > { %s3740_s15 = scalar_lea.vmem %s3739_s17, 32  ;;  %p3741_p3 = scmp.lt.s32.totalorder %s2708_s25, %s3739_s17 }
 0xad7   : > { %p3742_p9 = scmp.lt.s32.totalorder %s3740_s15, %s3734_s4 }
 0xad8   : > { %2593 = vperm.xlu1 %3318, %v2590_v33  }
 0xad9   : > { %p3743_p13 = por %p3742_p9, %p3741_p3 }
 0xadb   : > { %p3744_p0 = pnand %p3743_p13, %p3737_p1 }
 0xb46   : > { %v2585_v59 = vpop.permute.xlu1 %2584 }
 0xb47   : > { %v2587_v61 = vsel %vm809_vm0, %v2453_v57, %v2585_v59 }
 0xb48   : > { %v2588_v39 = vsel %vm1812_vm6, %v2587_v61, %v2582_v22 }
 0xb49   : > { %3166 = vmatpush3.xpose.msk.msra.mxu1 %vm1907_vm7, %v2588_v39 }
 0xb4c   : > { %3168 = vmatmul.mubr.msk.f32.vlgmr.msra.gmra.mrb[32].mxu1 %vm1907_vm7, %v2589_v40 }
 0xb4d   : > { %3747 = shalt.err (!%p3744_p0)
}
 0xb4e   : > { %s3748_s29 = scalar_lea.hbm %s4649_s5, 16  ;;  %s3752_s21 = scalar_lea.hbm %s4791_s28, 32 }
 0xb4f   : > { %p3749_p2 = scmp.ne.s32.totalorder %s4649_s5, %s3748_s29  ;;  %p3753_p11 = scmp.lt.u32.totalorder %s4649_s5, %s4791_s28 }
 0xb50   : > { %p3754_p6 = scmp.lt.u32.totalorder %s3752_s21, %s3748_s29  ;;  %p3756_p5 = scmp.lt.u32.totalorder %s3748_s29, %s4649_s5 }
 0xb51   : > { %p3750_p8 = pnand %p3749_p2, %p4792_p7 }
 0xb52   : > { %p3755_p12 = por %p3754_p6, %p3753_p11 }
 0xb53   : > { %p3751_p10 = pneg %p3750_p8 }
 0xb54   : > { %p3757_p4 = por %p3756_p5, %p3755_p12 }
 0xb56   : > { %p3758_p1 = pnand %p3757_p4, %p3751_p10 }
 0xb58   : > { %3761 = shalt.err (!%p3758_p1)
}
 0xb59   : > { %3205 = dma.vmem_to_hbm [thread:$0]  (%p4792_p7), %s2708_s25, 16, %s4649_s5, %s2682_s30   ;;  %v2594_v27 = vpop.permute.xlu1 %2593 }
 0xb5a   : > { %s728_s4 = scalar_lea.vmem [#allocation19], %s4267_s7  ;;  %v2599_v20 = vrot.slane %v2594_v27, %v4331_v49  ;;  %s4793_s23 = sshll.u32 %s3998_s24, 4 }
 0xb5b   : > { %s2694_s15 = sshll.u32 %s728_s4, 4  ;;  %s4794_s18 = sld [smem:[#allocation38_spill]]  ;;  %s4680_s15 = int_to_ptr.vmem [resolvable:$true] %s2694_s15 }
 0xb5c   : > { %s2678_s5 = scalar_lea.sflag [#allocation6], %s4267_s7  ;;  %s3762_s25 = scalar_lea.vmem %s4680_s15, 16 }
 0xb5d   : > { %p3763_p3 = scmp.ne.s32.totalorder %s4680_s15, %s3762_s25  ;;  %s3870_s30 = smov [#allocation19]  }
 0xb5e   : > { %s3766_s24 = sshll.u32 %s3870_s30, 4  ;;  %s3767_s24 = int_to_ptr.vmem [resolvable:$false] %s3766_s24 }
 0xb5f   : > { %p3764_p9 = pnand %p3763_p3, %p4792_p7  ;;  %s3768_s17 = scalar_lea.vmem %s3767_s24, 32 }
 0xb60   : > { %p3769_p0 = scmp.lt.s32.totalorder %s4680_s15, %s3767_s24  ;;  %p3770_p2 = scmp.lt.s32.totalorder %s3768_s17, %s3762_s25 }
 0xb61   : > { %s4678_s21 = scalar_lea.hbm %s4794_s18, %s4793_s23  ;;  %p3765_p13 = pneg %p3764_p9 }
 0xb62   : > { %p3771_p8 = por %p3770_p2, %p3769_p0 }
 0xb64   : > { %p3772_p10 = pnand %p3771_p8, %p3765_p13 }
 0xc1f   : > { %v2672_v14 = vpop.f32.mrb[32].mxu1 }
 0xc20   : > { %v2673_v13 = vadd.f32 %v2672_v14, %v2599_v20  ;;  %v3169_v35 = vpop.f32.mrb[33].mxu1 }
 0xc22   : > { %2676 = vst.msk [vmem:[%s728_s4] sm:$0x1] %vm2005_vm4, %v2673_v13 }
 0xc23   : > { %3775 = shalt.err (!%p3772_p10)
}
 0xc24   : > { %s3776_s7 = scalar_lea.hbm %s4678_s21, 16  ;;  %s3780_s29 = scalar_lea.hbm %s4794_s18, 32 }
 0xc25   : > { %p3777_p11 = scmp.ne.s32.totalorder %s4678_s21, %s3776_s7  ;;  %p3781_p5 = scmp.lt.u32.totalorder %s4678_s21, %s4794_s18 }
 0xc26   : > { %p3782_p4 = scmp.lt.u32.totalorder %s3780_s29, %s3776_s7  ;;  %p3784_p3 = scmp.lt.u32.totalorder %s3776_s7, %s4678_s21 }
 0xc27   : > { %p3778_p6 = pnand %p3777_p11, %p4792_p7 }
 0xc28   : > { %p3783_p1 = por %p3782_p4, %p3781_p5 }
 0xc29   : > { %p3779_p12 = pneg %p3778_p6 }
 0xc2a   : > { %p3785_p9 = por %p3784_p3, %p3783_p1 }
 0xc2c   : > { %p3786_p13 = pnand %p3785_p9, %p3779_p12 }
 0xc2e   : > { %3789 = shalt.err (!%p3786_p13)
}
 0xc2f   : > { %3204 = dma.vmem_to_hbm [thread:$0]  (%p4792_p7), %s4680_s15, 16, %s4678_s21, %s2678_s5  }
 0xc30 PF: > { %s2719_s25 = sand.u32 1, %s3836_s1   ;;  %p4795_p0 = scmp.ne.s32.totalorder %s4775_s16, 0 }
 0xc31   : > { %p4796_p2 = scmp.ge.s32.totalorder %s3848_s2, 2  ;;  %s2720_s24 = scalar_lea.sflag [#allocation6], %s2719_s25 }
 0xc33   : > { %p3238_p8 = pnand %p4796_p2, %p4795_p0 }
 0xc35   : > { %3827 = dma.done.wait (!%p3238_p8), %s2720_s24, 16  }
 0xc36   : > { %3829 = vsyncadd (!%p3238_p8), %s2720_s24, 4294967280  ;;  %s2728_s17 = scalar_lea.sflag [#allocation21], %s2719_s25 }
 0xc37   : > { %3831 = dma.done.wait (!%p3238_p8), %s2728_s17, 16  }
 0xc38   : > { %3833 = vsyncadd (!%p3238_p8), %s2728_s17, 4294967280  ;;  %p44_p7 = scmp.ge.s32.totalorder %s4191_s3, 4   ;;  %s4797_s1 = smov %s3840_s22 }
 0xc39   : > { %s4798_s22 = smov %s3844_s12  ;;  %s4799_s12 = smov %s4202_s19 }
 0xc3a   : > { %s4800_s2 = smov %s4191_s3  ;;  %46 = sbr.rel (!%p44_p7) target bundleno = 23 (0x17), region = 186 }
 0xc41   :  { %2732 = vsyncpa [#allocation5], 1 }
 0xc42   :  { %2734 = vsyncpa [#allocation5 + $0x1], 1 }
 0xc43   :  { %2735 = vsyncpa [#allocation8], 1 }
 0xc44   :  { %2736 = vsyncpa [#allocation11], 1 }
 0xc45   :  { %2737 = vsyncpa [#allocation14], 1 }
 0xc46   :  { %2738 = vsyncpa [#allocation17], 1 }
 0xc47   :  { %2739 = vsyncpa [#allocation6], 1 }
 0xc48   :  { %2741 = vsyncpa [#allocation6 + $0x1], 1 }
 0xc49   :  { %2742 = vsyncpa [#allocation21], 1 }
 0xc4a   :  { %2744 = vsyncpa [#allocation21 + $0x1], 1 }

</bundles_post_ra>
